<compile_context>
chip_gen: v7x
topology: tpu7x:2x2x1
jax: 0.10.0
libtpu: 0.0.40
codegen_flags: <defaults>
</compile_context>

<pallas_src>
import functools

import numpy as np
import jax
import jax.numpy as jnp
from jax import lax
from jax.experimental import pallas as pl
from jax.experimental.pallas import tpu as pltpu

# Architecture channel widths.
C1, C2, C3 = 8, 16, 32
NUM_CLASSES = 10


# ---------------------------------------------------------------------------
# Fused per-image kernel
# ---------------------------------------------------------------------------
def _cnn_kernel(*refs, with_inters):
    (x_ref, w1_ref, a1_ref, w2_ref, a2_ref, w3_ref, a3_ref,
     w4_ref, a4_ref, w5_ref, a5_ref,
     sv1_ref, sh1_ref, sv2_ref, sh2_ref, wh_ref, bh_ref) = refs[:17]
    n_out = 6 if with_inters else 1
    out_refs = refs[17:17 + n_out]
    x2s, x3s, x4s, x5s = refs[17 + n_out:]

    f32 = jnp.float32
    bf16 = jnp.bfloat16

    def conv(xpad, w_ref, a_ref):
        """'same' 3x3 conv on one image in (rows=y, lanes=x*Cin) layout.

        xpad: (h+2, W*Cin) padded rows (rows 0 and h+1 are zero).  The three
        dy taps are 1-row shifts; dx taps + the x boundary are folded into the
        banded lane-space weight matrices w_ref[dy] of shape (W*Cin, W*Cout).
        bf16 operands, f32 accumulation; bias + ReLU epilogue in f32.
        """
        h = xpad.shape[0] - 2
        xb = xpad.astype(bf16)
        acc = jnp.dot(xb[0:h, :], w_ref[0], preferred_element_type=f32)
        acc = acc + jnp.dot(xb[1:h + 1, :], w_ref[1], preferred_element_type=f32)
        acc = acc + jnp.dot(xb[2:h + 2, :], w_ref[2], preferred_element_type=f32)
        return jnp.maximum(acc + a_ref[...], 0.0)            # (h, W*Cout) f32

    def pool(y, sv_ref, sh_ref):
        """2x2 stride-2 maxpool of y (rows=y, lanes=x*C): vertical max via two
        tiny row-selection dots, horizontal max via two tiny lane-selection
        dots (constant-size matrices, independent of batch / resolution)."""
        top = jnp.dot(sv_ref[0], y, preferred_element_type=f32)
        bot = jnp.dot(sv_ref[1], y, preferred_element_type=f32)
        v = jnp.maximum(top, bot)
        left = jnp.dot(v, sh_ref[0], preferred_element_type=f32)
        right = jnp.dot(v, sh_ref[1], preferred_element_type=f32)
        return jnp.maximum(left, right)

    def fill_pad(scr, interior):
        """Write interior rows into scratch with zeroed 1-row top/bottom
        margins (only margins + interior are stored; no full-buffer fill)."""
        h = interior.shape[0]
        z = jnp.zeros((1, scr.shape[1]), scr.dtype)
        scr[0:1, :] = z
        scr[h + 1:h + 2, :] = z
        scr[1:h + 1, :] = interior.astype(scr.dtype)

    # conv1 + bn1 + relu -> maxpool
    y1 = conv(x_ref[0], w1_ref, a1_ref)                      # (H1, W1*C1)
    fill_pad(x2s, pool(y1, sv1_ref, sh1_ref))                # (H2+2, W2*C1)

    # conv2 + bn2 + relu -> maxpool
    y2 = conv(x2s[...], w2_ref, a2_ref)                      # (H2, W2*C2)
    fill_pad(x3s, pool(y2, sv2_ref, sh2_ref))                # (H3+2, W3*C2)

    # conv3 + bn3 + relu
    y3 = conv(x3s[...], w3_ref, a3_ref)                      # (H3, W3*C3)
    fill_pad(x4s, y3)

    # conv4 + bn4 + relu
    y4 = conv(x4s[...], w4_ref, a4_ref)
    fill_pad(x5s, y4)

    # conv5 + relu (no BN)
    y5 = conv(x5s[...], w5_ref, a5_ref)                      # (H3, W3*C3)

    # global avgpool + fc (1/(H3*W3) scaling folded into wh_ref)
    pooled = jnp.sum(y5, axis=0, keepdims=True)              # (1, W3*C3) f32
    logits = jnp.dot(pooled, wh_ref[...], preferred_element_type=f32) + bh_ref[...]

    out_refs[0][0] = logits.astype(out_refs[0].dtype)        # (1, 10)
    if with_inters:
        for o_ref, y in zip(out_refs[1:], (y1, y2, y3, y4, y5)):
            o_ref[0] = y.astype(o_ref.dtype)


# ---------------------------------------------------------------------------
# Parameter / constant packing (trace time)
# ---------------------------------------------------------------------------
def _fold_conv_bn(conv, bn):
    """Fold inference-mode BN into conv: returns (w (Co,Ci,3,3), bias (Co,))."""
    w, b = conv
    if bn is None:
        return w, b
    gamma, beta, mean, var, eps = bn
    scale = gamma * lax.rsqrt(var + eps)
    return w * scale[:, None, None, None], b * scale + beta - mean * scale


def _band_expander(width):
    """E[dx, xi, xo] = 1 iff xi == xo + dx - 1 and 0 <= xi < width."""
    e = np.zeros((3, width, width), np.float32)
    for dx in range(3):
        for xo in range(width):
            xi = xo + dx - 1
            if 0 <= xi < width:
                e[dx, xi, xo] = 1.0
    return e


def _banded_weights(w, bias, width):
    """Pack a folded (Co,Ci,3,3) conv into 3 banded lane-space matrices
    (3, width*Ci, width*Co) (bf16) plus a lane-tiled bias (1, width*Co) f32."""
    co, ci = int(w.shape[0]), int(w.shape[1])
    wt = jnp.transpose(w, (2, 3, 1, 0))                      # (dy, dx, ci, co)
    e = _band_expander(width)
    band = jnp.einsum("aio,dace->dicoe", e, wt).reshape(3, width * ci, width * co)
    lane_bias = jnp.tile(bias, width).reshape(1, width * co)
    return band.astype(jnp.bfloat16), lane_bias.astype(jnp.float32)


def _pool_mats(h, width, c):
    """Row / lane 0-1 selection matrices for a 2x2 stride-2 maxpool in the
    (rows=y, lanes=x*c) layout."""
    h2, w2 = h // 2, width // 2
    sv = np.zeros((2, h2, h), np.float32)
    for yo in range(h2):
        sv[0, yo, 2 * yo] = 1.0
        sv[1, yo, 2 * yo + 1] = 1.0
    sh = np.zeros((2, width * c, w2 * c), np.float32)
    for xo in range(w2):
        for ch in range(c):
            sh[0, (2 * xo) * c + ch, xo * c + ch] = 1.0
            sh[1, (2 * xo + 1) * c + ch, xo * c + ch] = 1.0
    return jnp.asarray(sv), jnp.asarray(sh)


def _const_spec(shape):
    nd = len(shape)
    return pl.BlockSpec(shape, lambda n: (0,) * nd)


# ---------------------------------------------------------------------------
# Forward pass (matches CNN.forward semantics)
# ---------------------------------------------------------------------------
@functools.partial(jax.jit, static_argnames=("intermediate_outputs",))
def cnn_forward(x_nchw, params, intermediate_outputs=False):
    N, C0, H1, W1 = x_nchw.shape
    H2, W2 = H1 // 2, W1 // 2
    H3, W3 = H2 // 2, W2 // 2

    # --- parameter prep: BN folding + banded lane-space repacking ---
    w1, a1 = _banded_weights(*_fold_conv_bn(params["conv1"], params["bn1"]), W1)
    w2, a2 = _banded_weights(*_fold_conv_bn(params["conv2"], params["bn2"]), W2)
    w3, a3 = _banded_weights(*_fold_conv_bn(params["conv3"], params["bn3"]), W3)
    w4, a4 = _banded_weights(*_fold_conv_bn(params["conv4"], params["bn4"]), W3)
    w5, a5 = _banded_weights(*_fold_conv_bn(params["conv5"], None), W3)

    sv1, sh1 = _pool_mats(H1, W1, C1)
    sv2, sh2 = _pool_mats(H2, W2, C2)

    fc_w, fc_b = params["fc"]                                # (10, 32), (10,)
    w_head = (jnp.tile(fc_w.T, (W3, 1)) / float(H3 * W3)).astype(jnp.float32)
    b_head = fc_b.reshape(1, NUM_CLASSES).astype(jnp.float32)

    # --- input: NCHW -> per-image (rows=y, lanes=x*C) with zero row margins ---
    x = jnp.transpose(x_nchw, (0, 2, 3, 1)).reshape(N, H1, W1 * C0)
    x1p = jnp.pad(x, ((0, 0), (1, 1), (0, 0))).astype(jnp.bfloat16)

    consts = [w1, a1, w2, a2, w3, a3, w4, a4, w5, a5,
              sv1, sh1, sv2, sh2, w_head, b_head]

    in_specs = [pl.BlockSpec((1, H1 + 2, W1 * C0), lambda n: (n, 0, 0))]
    in_specs += [_const_spec(tuple(int(d) for d in cst.shape)) for cst in consts]

    out_shape = [jax.ShapeDtypeStruct((N, 1, NUM_CLASSES), jnp.float32)]
    out_specs = [pl.BlockSpec((1, 1, NUM_CLASSES), lambda n: (n, 0, 0))]
    if intermediate_outputs:
        for h, w, c in ((H1, W1, C1), (H2, W2, C2),
                        (H3, W3, C3), (H3, W3, C3), (H3, W3, C3)):
            out_shape.append(jax.ShapeDtypeStruct((N, h, w * c), jnp.float32))
            out_specs.append(pl.BlockSpec((1, h, w * c), lambda n: (n, 0, 0)))

    scratch_shapes = [
        pltpu.VMEM((H2 + 2, W2 * C1), jnp.float32),   # padded input to conv2
        pltpu.VMEM((H3 + 2, W3 * C2), jnp.float32),   # padded input to conv3
        pltpu.VMEM((H3 + 2, W3 * C3), jnp.float32),   # padded input to conv4
        pltpu.VMEM((H3 + 2, W3 * C3), jnp.float32),   # padded input to conv5
    ]

    flops = 2 * N * (3 * H1 * (W1 * C0) * (W1 * C1)
                     + 3 * H2 * (W2 * C1) * (W2 * C2)
                     + 3 * H3 * (W3 * C2) * (W3 * C3)
                     + 6 * H3 * (W3 * C3) * (W3 * C3)
                     + 2 * H2 * H1 * (W1 * C1) + 2 * H2 * (W1 * C1) * (W2 * C1)
                     + 2 * H3 * H2 * (W2 * C2) + 2 * H3 * (W2 * C2) * (W3 * C2)
                     + (W3 * C3) * NUM_CLASSES)
    in_bytes = int(x1p.size) * 2 + sum(
        int(c.size) * int(jnp.dtype(c.dtype).itemsize) for c in consts)
    out_bytes = sum(int(np.prod(s.shape)) * 4 for s in out_shape)

    results = pl.pallas_call(
        functools.partial(_cnn_kernel, with_inters=intermediate_outputs),
        grid=(N,),
        in_specs=in_specs,
        out_specs=out_specs,
        out_shape=out_shape,
        scratch_shapes=scratch_shapes,
        compiler_params=pltpu.CompilerParams(
            dimension_semantics=("parallel",)),
        cost_estimate=pl.CostEstimate(flops=flops, transcendentals=0,
                                      bytes_accessed=in_bytes + out_bytes),
    )(x1p, *consts)

    final_out = results[0].reshape(N, NUM_CLASSES)
    if not intermediate_outputs:
        return final_out

    inters = []
    for y, (h, w, c) in zip(results[1:], ((H1, W1, C1), (H2, W2, C2),
                                          (H3, W3, C3), (H3, W3, C3),
                                          (H3, W3, C3))):
        inters.append(jnp.transpose(y.reshape(N, h, w, c), (0, 3, 1, 2)))
    return final_out, inters


# ---------------------------------------------------------------------------
# Parameters (deterministic, synthetic)
# ---------------------------------------------------------------------------
def init_params(key):
    def conv_p(k, c_in, c_out):
        k1, k2 = jax.random.split(k)
        std = (2.0 / (c_in * 9)) ** 0.5
        w = jax.random.normal(k1, (c_out, c_in, 3, 3), jnp.float32) * std
        b = jax.random.normal(k2, (c_out,), jnp.float32) * 0.01
        return w, b

    def bn_p(k, c):
        k1, k2 = jax.random.split(k)
        gamma = 1.0 + 0.1 * jax.random.normal(k1, (c,), jnp.float32)
        beta = 0.1 * jax.random.normal(k2, (c,), jnp.float32)
        mean = jnp.zeros((c,), jnp.float32)   # running_mean (inference mode)
        var = jnp.ones((c,), jnp.float32)     # running_var  (inference mode)
        return (gamma, beta, mean, var, 1e-5)

    keys = jax.random.split(key, 11)
    params = {
        "conv1": conv_p(keys[0], 4, C1),   "bn1": bn_p(keys[1], C1),
        "conv2": conv_p(keys[2], C1, C2),  "bn2": bn_p(keys[3], C2),
        "conv3": conv_p(keys[4], C2, C3),  "bn3": bn_p(keys[5], C3),
        "conv4": conv_p(keys[6], C3, C3),  "bn4": bn_p(keys[7], C3),
        "conv5": conv_p(keys[8], C3, C3),
    }
    std = (2.0 / C3) ** 0.5
    fc_w = jax.random.normal(keys[9], (NUM_CLASSES, C3), jnp.float32) * std
    fc_b = jax.random.normal(keys[10], (NUM_CLASSES,), jnp.float32) * 0.01
    params["fc"] = (fc_w, fc_b)
    return params


# ---------------------------------------------------------------------------
# Pure-JAX f32 reference (numerical sanity check of the fused kernel)
# ---------------------------------------------------------------------------
def _reference_forward(x_nchw, params):
    x = jnp.transpose(x_nchw, (0, 2, 3, 1)).astype(jnp.float32)

    def conv_bn_relu(inp, conv, bn):
        w, b = conv
        c_out = w.shape[0]
        if bn is not None:
            gamma, beta, mean, var, eps = bn
            scale = gamma / jnp.sqrt(var + eps)
            bias = b * scale + beta - mean * scale
        else:
            scale = jnp.ones((c_out,), jnp.float32)
            bias = b
        n, h, w_, _ = inp.shape
        xp = jnp.pad(inp, ((0, 0), (1, 1), (1, 1), (0, 0)))
        acc = jnp.zeros((n, h, w_, c_out), jnp.float32)
        for dy in range(3):
            for dx in range(3):
                wk = w[:, :, dy, dx].T * scale[None, :]
                acc = acc + jnp.einsum("nhwc,cd->nhwd",
                                       xp[:, dy:dy + h, dx:dx + w_, :], wk)
        return jnp.maximum(acc + bias, 0.0)

    def maxpool(t):
        n, h, w_, c = t.shape
        return t.reshape(n, h // 2, 2, w_ // 2, 2, c).max(axis=(2, 4))

    c1 = conv_bn_relu(x, params["conv1"], params["bn1"]); p1 = maxpool(c1)
    c2 = conv_bn_relu(p1, params["conv2"], params["bn2"]); p2 = maxpool(c2)
    c3 = conv_bn_relu(p2, params["conv3"], params["bn3"])
    c4 = conv_bn_relu(c3, params["conv4"], params["bn4"])
    c5 = conv_bn_relu(c4, params["conv5"], None)
    pooled = jnp.mean(c5, axis=(1, 2))
    fc_w, fc_b = params["fc"]
    out = pooled @ fc_w.T + fc_b
    to_nchw = lambda t: jnp.transpose(t, (0, 3, 1, 2))
    return out, [to_nchw(c1), to_nchw(c2), to_nchw(c3), to_nchw(c4), to_nchw(c5)]


# ---------------------------------------------------------------------------
if __name__ == "__main__":
    key = jax.random.PRNGKey(0)
    k_param, k_x = jax.random.split(key)
    params = init_params(k_param)
    x = jax.random.normal(k_x, (2, 4, 16, 16), jnp.float32)  # NCHW, like PyTorch

    out = cnn_forward(x, params)
    jax.block_until_ready(out)
    assert out.shape == (2, 10) and out.dtype == jnp.float32

    out2, inters = cnn_forward(x, params, intermediate_outputs=True)
    jax.block_until_ready((out2, inters))
    assert len(inters) == 5 and inters[0].shape == (2, 8, 16, 16)
    assert inters[1].shape == (2, 16, 8, 8) and inters[4].shape == (2, 32, 4, 4)

    # numerical sanity check vs a plain-JAX f32 reference; the kernel uses
    # bf16 MXU operands with f32 accumulation, so tolerances are bf16-level
    # (rounding accumulates over 5 conv layers).
    ref_out, ref_inters = _reference_forward(x, params)
    assert float(jnp.max(jnp.abs(out - ref_out))) < 0.15, "final output mismatch"
    for got, want in zip(inters, ref_inters):
        assert float(jnp.max(jnp.abs(got - want))) < 0.5, "intermediate mismatch"

    print("KERNEL_OK")
</pallas_src>

<mosaic_0001>
module attributes {stable_mosaic.version = 11 : i64} {
  func.func @_cnn_kernel(%arg0: i32, %arg1: memref<1x18x64xbf16, #tpu.memory_space<vmem>>, %arg2: memref<3x64x128xbf16, #tpu.memory_space<vmem>>, %arg3: memref<1x128xf32, #tpu.memory_space<vmem>>, %arg4: memref<3x64x128xbf16, #tpu.memory_space<vmem>>, %arg5: memref<1x128xf32, #tpu.memory_space<vmem>>, %arg6: memref<3x64x128xbf16, #tpu.memory_space<vmem>>, %arg7: memref<1x128xf32, #tpu.memory_space<vmem>>, %arg8: memref<3x128x128xbf16, #tpu.memory_space<vmem>>, %arg9: memref<1x128xf32, #tpu.memory_space<vmem>>, %arg10: memref<3x128x128xbf16, #tpu.memory_space<vmem>>, %arg11: memref<1x128xf32, #tpu.memory_space<vmem>>, %arg12: memref<2x8x16xf32, #tpu.memory_space<vmem>>, %arg13: memref<2x128x64xf32, #tpu.memory_space<vmem>>, %arg14: memref<2x4x8xf32, #tpu.memory_space<vmem>>, %arg15: memref<2x128x64xf32, #tpu.memory_space<vmem>>, %arg16: memref<128x10xf32, #tpu.memory_space<vmem>>, %arg17: memref<1x10xf32, #tpu.memory_space<vmem>>, %arg18: memref<1x1x10xf32, #tpu.memory_space<vmem>>, %arg19: memref<10x64xf32, #tpu.memory_space<vmem>>, %arg20: memref<6x64xf32, #tpu.memory_space<vmem>>, %arg21: memref<6x128xf32, #tpu.memory_space<vmem>>, %arg22: memref<6x128xf32, #tpu.memory_space<vmem>>) attributes {dimension_semantics = [#tpu.dimension_semantics<parallel>], iteration_bounds = array<i64: 2>, scalar_prefetch = 0 : i64, scratch_operands = 4 : i64, tpu.core_type = #tpu.core_type<tc>, window_params = [{transform_indices = @transform_0, window_bounds = array<i64: 1, 18, 64>}, {pipeline_mode = #tpu.pipeline_mode<synchronous>, transform_indices = @transform_1, window_bounds = array<i64: 3, 64, 128>}, {pipeline_mode = #tpu.pipeline_mode<synchronous>, transform_indices = @transform_2, window_bounds = array<i64: 1, 128>}, {pipeline_mode = #tpu.pipeline_mode<synchronous>, transform_indices = @transform_3, window_bounds = array<i64: 3, 64, 128>}, {pipeline_mode = #tpu.pipeline_mode<synchronous>, transform_indices = @transform_4, window_bounds = array<i64: 1, 128>}, {pipeline_mode = #tpu.pipeline_mode<synchronous>, transform_indices = @transform_5, window_bounds = array<i64: 3, 64, 128>}, {pipeline_mode = #tpu.pipeline_mode<synchronous>, transform_indices = @transform_6, window_bounds = array<i64: 1, 128>}, {pipeline_mode = #tpu.pipeline_mode<synchronous>, transform_indices = @transform_7, window_bounds = array<i64: 3, 128, 128>}, {pipeline_mode = #tpu.pipeline_mode<synchronous>, transform_indices = @transform_8, window_bounds = array<i64: 1, 128>}, {pipeline_mode = #tpu.pipeline_mode<synchronous>, transform_indices = @transform_9, window_bounds = array<i64: 3, 128, 128>}, {pipeline_mode = #tpu.pipeline_mode<synchronous>, transform_indices = @transform_10, window_bounds = array<i64: 1, 128>}, {pipeline_mode = #tpu.pipeline_mode<synchronous>, transform_indices = @transform_11, window_bounds = array<i64: 2, 8, 16>}, {pipeline_mode = #tpu.pipeline_mode<synchronous>, transform_indices = @transform_12, window_bounds = array<i64: 2, 128, 64>}, {pipeline_mode = #tpu.pipeline_mode<synchronous>, transform_indices = @transform_13, window_bounds = array<i64: 2, 4, 8>}, {pipeline_mode = #tpu.pipeline_mode<synchronous>, transform_indices = @transform_14, window_bounds = array<i64: 2, 128, 64>}, {pipeline_mode = #tpu.pipeline_mode<synchronous>, transform_indices = @transform_15, window_bounds = array<i64: 128, 10>}, {pipeline_mode = #tpu.pipeline_mode<synchronous>, transform_indices = @transform_16, window_bounds = array<i64: 1, 10>}, {transform_indices = @transform_17, window_bounds = array<i64: 1, 1, 10>}]} {
    %c0 = arith.constant 0 : index
    %c0_0 = arith.constant 0 : index
    %c0_1 = arith.constant 0 : index
    %0 = vector.load %arg1[%c0, %c0_0, %c0_1] : memref<1x18x64xbf16, #tpu.memory_space<vmem>>, vector<1x18x64xbf16>
    %1 = vector.shape_cast %0 : vector<1x18x64xbf16> to vector<18x64xbf16>
    %2 = vector.extract_strided_slice %1 {offsets = [0, 0], sizes = [16, 64], strides = [1, 1]} : vector<18x64xbf16> to vector<16x64xbf16>
    %c0_2 = arith.constant 0 : index
    %c0_3 = arith.constant 0 : index
    %c0_4 = arith.constant 0 : index
    %3 = vector.load %arg2[%c0_2, %c0_3, %c0_4] : memref<3x64x128xbf16, #tpu.memory_space<vmem>>, vector<1x64x128xbf16>
    %4 = vector.shape_cast %3 : vector<1x64x128xbf16> to vector<64x128xbf16>
    %cst = arith.constant dense<0.000000e+00> : vector<16x128xf32>
    %5 = tpu.matmul %2, %4, %cst {dimension_numbers = #tpu.dot_dimension_numbers<[1], [0], [0], [1], [0, 0, 1, 1], [], []>} : vector<16x64xbf16>, vector<64x128xbf16>, vector<16x128xf32> -> vector<16x128xf32>
    %6 = vector.extract_strided_slice %1 {offsets = [1, 0], sizes = [16, 64], strides = [1, 1]} : vector<18x64xbf16> to vector<16x64xbf16>
    %c1 = arith.constant 1 : index
    %c0_5 = arith.constant 0 : index
    %c0_6 = arith.constant 0 : index
    %7 = vector.load %arg2[%c1, %c0_5, %c0_6] : memref<3x64x128xbf16, #tpu.memory_space<vmem>>, vector<1x64x128xbf16>
    %8 = vector.shape_cast %7 : vector<1x64x128xbf16> to vector<64x128xbf16>
    %cst_7 = arith.constant dense<0.000000e+00> : vector<16x128xf32>
    %9 = tpu.matmul %6, %8, %cst_7 {dimension_numbers = #tpu.dot_dimension_numbers<[1], [0], [0], [1], [0, 0, 1, 1], [], []>} : vector<16x64xbf16>, vector<64x128xbf16>, vector<16x128xf32> -> vector<16x128xf32>
    %10 = arith.addf %5, %9 : vector<16x128xf32>
    %11 = vector.extract_strided_slice %1 {offsets = [2, 0], sizes = [16, 64], strides = [1, 1]} : vector<18x64xbf16> to vector<16x64xbf16>
    %c2 = arith.constant 2 : index
    %c0_8 = arith.constant 0 : index
    %c0_9 = arith.constant 0 : index
    %12 = vector.load %arg2[%c2, %c0_8, %c0_9] : memref<3x64x128xbf16, #tpu.memory_space<vmem>>, vector<1x64x128xbf16>
    %13 = vector.shape_cast %12 : vector<1x64x128xbf16> to vector<64x128xbf16>
    %cst_10 = arith.constant dense<0.000000e+00> : vector<16x128xf32>
    %14 = tpu.matmul %11, %13, %cst_10 {dimension_numbers = #tpu.dot_dimension_numbers<[1], [0], [0], [1], [0, 0, 1, 1], [], []>} : vector<16x64xbf16>, vector<64x128xbf16>, vector<16x128xf32> -> vector<16x128xf32>
    %15 = arith.addf %10, %14 : vector<16x128xf32>
    %c0_11 = arith.constant 0 : index
    %c0_12 = arith.constant 0 : index
    %16 = vector.load %arg3[%c0_11, %c0_12] : memref<1x128xf32, #tpu.memory_space<vmem>>, vector<1x128xf32>
    %17 = vector.broadcast %16 : vector<1x128xf32> to vector<16x128xf32>
    %18 = arith.addf %15, %17 : vector<16x128xf32>
    %cst_13 = arith.constant 0.000000e+00 : f32
    %19 = vector.broadcast %cst_13 : f32 to vector<16x128xf32>
    %20 = arith.maximumf %18, %19 : vector<16x128xf32>
    %c0_14 = arith.constant 0 : index
    %c0_15 = arith.constant 0 : index
    %c0_16 = arith.constant 0 : index
    %21 = vector.load %arg12[%c0_14, %c0_15, %c0_16] : memref<2x8x16xf32, #tpu.memory_space<vmem>>, vector<1x8x16xf32>
    %22 = vector.shape_cast %21 : vector<1x8x16xf32> to vector<8x16xf32>
    %cst_17 = arith.constant dense<0.000000e+00> : vector<8x128xf32>
    %23 = tpu.matmul %22, %20, %cst_17 {dimension_numbers = #tpu.dot_dimension_numbers<[1], [0], [0], [1], [0, 0, 1, 1], [], []>} : vector<8x16xf32>, vector<16x128xf32>, vector<8x128xf32> -> vector<8x128xf32>
    %c1_18 = arith.constant 1 : index
    %c0_19 = arith.constant 0 : index
    %c0_20 = arith.constant 0 : index
    %24 = vector.load %arg12[%c1_18, %c0_19, %c0_20] : memref<2x8x16xf32, #tpu.memory_space<vmem>>, vector<1x8x16xf32>
    %25 = vector.shape_cast %24 : vector<1x8x16xf32> to vector<8x16xf32>
    %cst_21 = arith.constant dense<0.000000e+00> : vector<8x128xf32>
    %26 = tpu.matmul %25, %20, %cst_21 {dimension_numbers = #tpu.dot_dimension_numbers<[1], [0], [0], [1], [0, 0, 1, 1], [], []>} : vector<8x16xf32>, vector<16x128xf32>, vector<8x128xf32> -> vector<8x128xf32>
    %27 = arith.maximumf %23, %26 : vector<8x128xf32>
    %c0_22 = arith.constant 0 : index
    %c0_23 = arith.constant 0 : index
    %c0_24 = arith.constant 0 : index
    %28 = vector.load %arg13[%c0_22, %c0_23, %c0_24] : memref<2x128x64xf32, #tpu.memory_space<vmem>>, vector<1x128x64xf32>
    %29 = vector.shape_cast %28 : vector<1x128x64xf32> to vector<128x64xf32>
    %cst_25 = arith.constant dense<0.000000e+00> : vector<8x64xf32>
    %30 = tpu.matmul %27, %29, %cst_25 {dimension_numbers = #tpu.dot_dimension_numbers<[1], [0], [0], [1], [0, 0, 1, 1], [], []>} : vector<8x128xf32>, vector<128x64xf32>, vector<8x64xf32> -> vector<8x64xf32>
    %c1_26 = arith.constant 1 : index
    %c0_27 = arith.constant 0 : index
    %c0_28 = arith.constant 0 : index
    %31 = vector.load %arg13[%c1_26, %c0_27, %c0_28] : memref<2x128x64xf32, #tpu.memory_space<vmem>>, vector<1x128x64xf32>
    %32 = vector.shape_cast %31 : vector<1x128x64xf32> to vector<128x64xf32>
    %cst_29 = arith.constant dense<0.000000e+00> : vector<8x64xf32>
    %33 = tpu.matmul %27, %32, %cst_29 {dimension_numbers = #tpu.dot_dimension_numbers<[1], [0], [0], [1], [0, 0, 1, 1], [], []>} : vector<8x128xf32>, vector<128x64xf32>, vector<8x64xf32> -> vector<8x64xf32>
    %34 = arith.maximumf %30, %33 : vector<8x64xf32>
    %cst_30 = arith.constant 0.000000e+00 : f32
    %35 = vector.broadcast %cst_30 : f32 to vector<1x64xf32>
    %c0_31 = arith.constant 0 : index
    %c0_32 = arith.constant 0 : index
    %36 = vector.load %arg19[%c0_31, %c0_32] : memref<10x64xf32, #tpu.memory_space<vmem>>, vector<1x64xf32>
    tpu.vector_store %arg19[%c0_31, %c0_32], %35 {strides = array<i32>} : memref<10x64xf32, #tpu.memory_space<vmem>>, vector<1x64xf32>,
    %c9 = arith.constant 9 : index
    %c0_33 = arith.constant 0 : index
    %37 = vector.load %arg19[%c9, %c0_33] : memref<10x64xf32, #tpu.memory_space<vmem>>, vector<1x64xf32>
    tpu.vector_store %arg19[%c9, %c0_33], %35 {strides = array<i32>} : memref<10x64xf32, #tpu.memory_space<vmem>>, vector<1x64xf32>,
    %c1_34 = arith.constant 1 : index
    %c0_35 = arith.constant 0 : index
    %38 = vector.load %arg19[%c1_34, %c0_35] : memref<10x64xf32, #tpu.memory_space<vmem>>, vector<8x64xf32>
    tpu.vector_store %arg19[%c1_34, %c0_35], %34 {strides = array<i32>} : memref<10x64xf32, #tpu.memory_space<vmem>>, vector<8x64xf32>,
    %c0_36 = arith.constant 0 : index
    %c0_37 = arith.constant 0 : index
    %39 = vector.load %arg19[%c0_36, %c0_37] : memref<10x64xf32, #tpu.memory_space<vmem>>, vector<10x64xf32>
    %40 = arith.truncf %39 : vector<10x64xf32> to vector<10x64xbf16>
    %41 = vector.extract_strided_slice %40 {offsets = [0, 0], sizes = [8, 64], strides = [1, 1]} : vector<10x64xbf16> to vector<8x64xbf16>
    %c0_38 = arith.constant 0 : index
    %c0_39 = arith.constant 0 : index
    %c0_40 = arith.constant 0 : index
    %42 = vector.load %arg4[%c0_38, %c0_39, %c0_40] : memref<3x64x128xbf16, #tpu.memory_space<vmem>>, vector<1x64x128xbf16>
    %43 = vector.shape_cast %42 : vector<1x64x128xbf16> to vector<64x128xbf16>
    %cst_41 = arith.constant dense<0.000000e+00> : vector<8x128xf32>
    %44 = tpu.matmul %41, %43, %cst_41 {dimension_numbers = #tpu.dot_dimension_numbers<[1], [0], [0], [1], [0, 0, 1, 1], [], []>} : vector<8x64xbf16>, vector<64x128xbf16>, vector<8x128xf32> -> vector<8x128xf32>
    %45 = vector.extract_strided_slice %40 {offsets = [1, 0], sizes = [8, 64], strides = [1, 1]} : vector<10x64xbf16> to vector<8x64xbf16>
    %c1_42 = arith.constant 1 : index
    %c0_43 = arith.constant 0 : index
    %c0_44 = arith.constant 0 : index
    %46 = vector.load %arg4[%c1_42, %c0_43, %c0_44] : memref<3x64x128xbf16, #tpu.memory_space<vmem>>, vector<1x64x128xbf16>
    %47 = vector.shape_cast %46 : vector<1x64x128xbf16> to vector<64x128xbf16>
    %cst_45 = arith.constant dense<0.000000e+00> : vector<8x128xf32>
    %48 = tpu.matmul %45, %47, %cst_45 {dimension_numbers = #tpu.dot_dimension_numbers<[1], [0], [0], [1], [0, 0, 1, 1], [], []>} : vector<8x64xbf16>, vector<64x128xbf16>, vector<8x128xf32> -> vector<8x128xf32>
    %49 = arith.addf %44, %48 : vector<8x128xf32>
    %50 = vector.extract_strided_slice %40 {offsets = [2, 0], sizes = [8, 64], strides = [1, 1]} : vector<10x64xbf16> to vector<8x64xbf16>
    %c2_46 = arith.constant 2 : index
    %c0_47 = arith.constant 0 : index
    %c0_48 = arith.constant 0 : index
    %51 = vector.load %arg4[%c2_46, %c0_47, %c0_48] : memref<3x64x128xbf16, #tpu.memory_space<vmem>>, vector<1x64x128xbf16>
    %52 = vector.shape_cast %51 : vector<1x64x128xbf16> to vector<64x128xbf16>
    %cst_49 = arith.constant dense<0.000000e+00> : vector<8x128xf32>
    %53 = tpu.matmul %50, %52, %cst_49 {dimension_numbers = #tpu.dot_dimension_numbers<[1], [0], [0], [1], [0, 0, 1, 1], [], []>} : vector<8x64xbf16>, vector<64x128xbf16>, vector<8x128xf32> -> vector<8x128xf32>
    %54 = arith.addf %49, %53 : vector<8x128xf32>
    %c0_50 = arith.constant 0 : index
    %c0_51 = arith.constant 0 : index
    %55 = vector.load %arg5[%c0_50, %c0_51] : memref<1x128xf32, #tpu.memory_space<vmem>>, vector<1x128xf32>
    %56 = vector.broadcast %55 : vector<1x128xf32> to vector<8x128xf32>
    %57 = arith.addf %54, %56 : vector<8x128xf32>
    %cst_52 = arith.constant 0.000000e+00 : f32
    %58 = vector.broadcast %cst_52 : f32 to vector<8x128xf32>
    %59 = arith.maximumf %57, %58 : vector<8x128xf32>
    %c0_53 = arith.constant 0 : index
    %c0_54 = arith.constant 0 : index
    %c0_55 = arith.constant 0 : index
    %60 = vector.load %arg14[%c0_53, %c0_54, %c0_55] : memref<2x4x8xf32, #tpu.memory_space<vmem>>, vector<1x4x8xf32>
    %61 = vector.shape_cast %60 : vector<1x4x8xf32> to vector<4x8xf32>
    %cst_56 = arith.constant dense<0.000000e+00> : vector<4x128xf32>
    %62 = tpu.matmul %61, %59, %cst_56 {dimension_numbers = #tpu.dot_dimension_numbers<[1], [0], [0], [1], [0, 0, 1, 1], [], []>} : vector<4x8xf32>, vector<8x128xf32>, vector<4x128xf32> -> vector<4x128xf32>
    %c1_57 = arith.constant 1 : index
    %c0_58 = arith.constant 0 : index
    %c0_59 = arith.constant 0 : index
    %63 = vector.load %arg14[%c1_57, %c0_58, %c0_59] : memref<2x4x8xf32, #tpu.memory_space<vmem>>, vector<1x4x8xf32>
    %64 = vector.shape_cast %63 : vector<1x4x8xf32> to vector<4x8xf32>
    %cst_60 = arith.constant dense<0.000000e+00> : vector<4x128xf32>
    %65 = tpu.matmul %64, %59, %cst_60 {dimension_numbers = #tpu.dot_dimension_numbers<[1], [0], [0], [1], [0, 0, 1, 1], [], []>} : vector<4x8xf32>, vector<8x128xf32>, vector<4x128xf32> -> vector<4x128xf32>
    %66 = arith.maximumf %62, %65 : vector<4x128xf32>
    %c0_61 = arith.constant 0 : index
    %c0_62 = arith.constant 0 : index
    %c0_63 = arith.constant 0 : index
    %67 = vector.load %arg15[%c0_61, %c0_62, %c0_63] : memref<2x128x64xf32, #tpu.memory_space<vmem>>, vector<1x128x64xf32>
    %68 = vector.shape_cast %67 : vector<1x128x64xf32> to vector<128x64xf32>
    %cst_64 = arith.constant dense<0.000000e+00> : vector<4x64xf32>
    %69 = tpu.matmul %66, %68, %cst_64 {dimension_numbers = #tpu.dot_dimension_numbers<[1], [0], [0], [1], [0, 0, 1, 1], [], []>} : vector<4x128xf32>, vector<128x64xf32>, vector<4x64xf32> -> vector<4x64xf32>
    %c1_65 = arith.constant 1 : index
    %c0_66 = arith.constant 0 : index
    %c0_67 = arith.constant 0 : index
    %70 = vector.load %arg15[%c1_65, %c0_66, %c0_67] : memref<2x128x64xf32, #tpu.memory_space<vmem>>, vector<1x128x64xf32>
    %71 = vector.shape_cast %70 : vector<1x128x64xf32> to vector<128x64xf32>
    %cst_68 = arith.constant dense<0.000000e+00> : vector<4x64xf32>
    %72 = tpu.matmul %66, %71, %cst_68 {dimension_numbers = #tpu.dot_dimension_numbers<[1], [0], [0], [1], [0, 0, 1, 1], [], []>} : vector<4x128xf32>, vector<128x64xf32>, vector<4x64xf32> -> vector<4x64xf32>
    %73 = arith.maximumf %69, %72 : vector<4x64xf32>
    %cst_69 = arith.constant 0.000000e+00 : f32
    %74 = vector.broadcast %cst_69 : f32 to vector<1x64xf32>
    %c0_70 = arith.constant 0 : index
    %c0_71 = arith.constant 0 : index
    %75 = vector.load %arg20[%c0_70, %c0_71] : memref<6x64xf32, #tpu.memory_space<vmem>>, vector<1x64xf32>
    tpu.vector_store %arg20[%c0_70, %c0_71], %74 {strides = array<i32>} : memref<6x64xf32, #tpu.memory_space<vmem>>, vector<1x64xf32>,
    %c5 = arith.constant 5 : index
    %c0_72 = arith.constant 0 : index
    %76 = vector.load %arg20[%c5, %c0_72] : memref<6x64xf32, #tpu.memory_space<vmem>>, vector<1x64xf32>
    tpu.vector_store %arg20[%c5, %c0_72], %74 {strides = array<i32>} : memref<6x64xf32, #tpu.memory_space<vmem>>, vector<1x64xf32>,
    %c1_73 = arith.constant 1 : index
    %c0_74 = arith.constant 0 : index
    %77 = vector.load %arg20[%c1_73, %c0_74] : memref<6x64xf32, #tpu.memory_space<vmem>>, vector<4x64xf32>
    tpu.vector_store %arg20[%c1_73, %c0_74], %73 {strides = array<i32>} : memref<6x64xf32, #tpu.memory_space<vmem>>, vector<4x64xf32>,
    %c0_75 = arith.constant 0 : index
    %c0_76 = arith.constant 0 : index
    %78 = vector.load %arg20[%c0_75, %c0_76] : memref<6x64xf32, #tpu.memory_space<vmem>>, vector<6x64xf32>
    %79 = arith.truncf %78 : vector<6x64xf32> to vector<6x64xbf16>
    %80 = vector.extract_strided_slice %79 {offsets = [0, 0], sizes = [4, 64], strides = [1, 1]} : vector<6x64xbf16> to vector<4x64xbf16>
    %c0_77 = arith.constant 0 : index
    %c0_78 = arith.constant 0 : index
    %c0_79 = arith.constant 0 : index
    %81 = vector.load %arg6[%c0_77, %c0_78, %c0_79] : memref<3x64x128xbf16, #tpu.memory_space<vmem>>, vector<1x64x128xbf16>
    %82 = vector.shape_cast %81 : vector<1x64x128xbf16> to vector<64x128xbf16>
    %cst_80 = arith.constant dense<0.000000e+00> : vector<4x128xf32>
    %83 = tpu.matmul %80, %82, %cst_80 {dimension_numbers = #tpu.dot_dimension_numbers<[1], [0], [0], [1], [0, 0, 1, 1], [], []>} : vector<4x64xbf16>, vector<64x128xbf16>, vector<4x128xf32> -> vector<4x128xf32>
    %84 = vector.extract_strided_slice %79 {offsets = [1, 0], sizes = [4, 64], strides = [1, 1]} : vector<6x64xbf16> to vector<4x64xbf16>
    %c1_81 = arith.constant 1 : index
    %c0_82 = arith.constant 0 : index
    %c0_83 = arith.constant 0 : index
    %85 = vector.load %arg6[%c1_81, %c0_82, %c0_83] : memref<3x64x128xbf16, #tpu.memory_space<vmem>>, vector<1x64x128xbf16>
    %86 = vector.shape_cast %85 : vector<1x64x128xbf16> to vector<64x128xbf16>
    %cst_84 = arith.constant dense<0.000000e+00> : vector<4x128xf32>
    %87 = tpu.matmul %84, %86, %cst_84 {dimension_numbers = #tpu.dot_dimension_numbers<[1], [0], [0], [1], [0, 0, 1, 1], [], []>} : vector<4x64xbf16>, vector<64x128xbf16>, vector<4x128xf32> -> vector<4x128xf32>
    %88 = arith.addf %83, %87 : vector<4x128xf32>
    %89 = vector.extract_strided_slice %79 {offsets = [2, 0], sizes = [4, 64], strides = [1, 1]} : vector<6x64xbf16> to vector<4x64xbf16>
    %c2_85 = arith.constant 2 : index
    %c0_86 = arith.constant 0 : index
    %c0_87 = arith.constant 0 : index
    %90 = vector.load %arg6[%c2_85, %c0_86, %c0_87] : memref<3x64x128xbf16, #tpu.memory_space<vmem>>, vector<1x64x128xbf16>
    %91 = vector.shape_cast %90 : vector<1x64x128xbf16> to vector<64x128xbf16>
    %cst_88 = arith.constant dense<0.000000e+00> : vector<4x128xf32>
    %92 = tpu.matmul %89, %91, %cst_88 {dimension_numbers = #tpu.dot_dimension_numbers<[1], [0], [0], [1], [0, 0, 1, 1], [], []>} : vector<4x64xbf16>, vector<64x128xbf16>, vector<4x128xf32> -> vector<4x128xf32>
    %93 = arith.addf %88, %92 : vector<4x128xf32>
    %c0_89 = arith.constant 0 : index
    %c0_90 = arith.constant 0 : index
    %94 = vector.load %arg7[%c0_89, %c0_90] : memref<1x128xf32, #tpu.memory_space<vmem>>, vector<1x128xf32>
    %95 = vector.broadcast %94 : vector<1x128xf32> to vector<4x128xf32>
    %96 = arith.addf %93, %95 : vector<4x128xf32>
    %cst_91 = arith.constant 0.000000e+00 : f32
    %97 = vector.broadcast %cst_91 : f32 to vector<4x128xf32>
    %98 = arith.maximumf %96, %97 : vector<4x128xf32>
    %cst_92 = arith.constant 0.000000e+00 : f32
    %99 = vector.broadcast %cst_92 : f32 to vector<1x128xf32>
    %c0_93 = arith.constant 0 : index
    %c0_94 = arith.constant 0 : index
    %100 = vector.load %arg21[%c0_93, %c0_94] : memref<6x128xf32, #tpu.memory_space<vmem>>, vector<1x128xf32>
    tpu.vector_store %arg21[%c0_93, %c0_94], %99 {strides = array<i32>} : memref<6x128xf32, #tpu.memory_space<vmem>>, vector<1x128xf32>,
    %c5_95 = arith.constant 5 : index
    %c0_96 = arith.constant 0 : index
    %101 = vector.load %arg21[%c5_95, %c0_96] : memref<6x128xf32, #tpu.memory_space<vmem>>, vector<1x128xf32>
    tpu.vector_store %arg21[%c5_95, %c0_96], %99 {strides = array<i32>} : memref<6x128xf32, #tpu.memory_space<vmem>>, vector<1x128xf32>,
    %c1_97 = arith.constant 1 : index
    %c0_98 = arith.constant 0 : index
    %102 = vector.load %arg21[%c1_97, %c0_98] : memref<6x128xf32, #tpu.memory_space<vmem>>, vector<4x128xf32>
    tpu.vector_store %arg21[%c1_97, %c0_98], %98 {strides = array<i32>} : memref<6x128xf32, #tpu.memory_space<vmem>>, vector<4x128xf32>,
    %c0_99 = arith.constant 0 : index
    %c0_100 = arith.constant 0 : index
    %103 = vector.load %arg21[%c0_99, %c0_100] : memref<6x128xf32, #tpu.memory_space<vmem>>, vector<6x128xf32>
    %104 = arith.truncf %103 : vector<6x128xf32> to vector<6x128xbf16>
    %105 = vector.extract_strided_slice %104 {offsets = [0, 0], sizes = [4, 128], strides = [1, 1]} : vector<6x128xbf16> to vector<4x128xbf16>
    %c0_101 = arith.constant 0 : index
    %c0_102 = arith.constant 0 : index
    %c0_103 = arith.constant 0 : index
    %106 = vector.load %arg8[%c0_101, %c0_102, %c0_103] : memref<3x128x128xbf16, #tpu.memory_space<vmem>>, vector<1x128x128xbf16>
    %107 = vector.shape_cast %106 : vector<1x128x128xbf16> to vector<128x128xbf16>
    %cst_104 = arith.constant dense<0.000000e+00> : vector<4x128xf32>
    %108 = tpu.matmul %105, %107, %cst_104 {dimension_numbers = #tpu.dot_dimension_numbers<[1], [0], [0], [1], [0, 0, 1, 1], [], []>} : vector<4x128xbf16>, vector<128x128xbf16>, vector<4x128xf32> -> vector<4x128xf32>
    %109 = vector.extract_strided_slice %104 {offsets = [1, 0], sizes = [4, 128], strides = [1, 1]} : vector<6x128xbf16> to vector<4x128xbf16>
    %c1_105 = arith.constant 1 : index
    %c0_106 = arith.constant 0 : index
    %c0_107 = arith.constant 0 : index
    %110 = vector.load %arg8[%c1_105, %c0_106, %c0_107] : memref<3x128x128xbf16, #tpu.memory_space<vmem>>, vector<1x128x128xbf16>
    %111 = vector.shape_cast %110 : vector<1x128x128xbf16> to vector<128x128xbf16>
    %cst_108 = arith.constant dense<0.000000e+00> : vector<4x128xf32>
    %112 = tpu.matmul %109, %111, %cst_108 {dimension_numbers = #tpu.dot_dimension_numbers<[1], [0], [0], [1], [0, 0, 1, 1], [], []>} : vector<4x128xbf16>, vector<128x128xbf16>, vector<4x128xf32> -> vector<4x128xf32>
    %113 = arith.addf %108, %112 : vector<4x128xf32>
    %114 = vector.extract_strided_slice %104 {offsets = [2, 0], sizes = [4, 128], strides = [1, 1]} : vector<6x128xbf16> to vector<4x128xbf16>
    %c2_109 = arith.constant 2 : index
    %c0_110 = arith.constant 0 : index
    %c0_111 = arith.constant 0 : index
    %115 = vector.load %arg8[%c2_109, %c0_110, %c0_111] : memref<3x128x128xbf16, #tpu.memory_space<vmem>>, vector<1x128x128xbf16>
    %116 = vector.shape_cast %115 : vector<1x128x128xbf16> to vector<128x128xbf16>
    %cst_112 = arith.constant dense<0.000000e+00> : vector<4x128xf32>
    %117 = tpu.matmul %114, %116, %cst_112 {dimension_numbers = #tpu.dot_dimension_numbers<[1], [0], [0], [1], [0, 0, 1, 1], [], []>} : vector<4x128xbf16>, vector<128x128xbf16>, vector<4x128xf32> -> vector<4x128xf32>
    %118 = arith.addf %113, %117 : vector<4x128xf32>
    %c0_113 = arith.constant 0 : index
    %c0_114 = arith.constant 0 : index
    %119 = vector.load %arg9[%c0_113, %c0_114] : memref<1x128xf32, #tpu.memory_space<vmem>>, vector<1x128xf32>
    %120 = vector.broadcast %119 : vector<1x128xf32> to vector<4x128xf32>
    %121 = arith.addf %118, %120 : vector<4x128xf32>
    %cst_115 = arith.constant 0.000000e+00 : f32
    %122 = vector.broadcast %cst_115 : f32 to vector<4x128xf32>
    %123 = arith.maximumf %121, %122 : vector<4x128xf32>
    %cst_116 = arith.constant 0.000000e+00 : f32
    %124 = vector.broadcast %cst_116 : f32 to vector<1x128xf32>
    %c0_117 = arith.constant 0 : index
    %c0_118 = arith.constant 0 : index
    %125 = vector.load %arg22[%c0_117, %c0_118] : memref<6x128xf32, #tpu.memory_space<vmem>>, vector<1x128xf32>
    tpu.vector_store %arg22[%c0_117, %c0_118], %124 {strides = array<i32>} : memref<6x128xf32, #tpu.memory_space<vmem>>, vector<1x128xf32>,
    %c5_119 = arith.constant 5 : index
    %c0_120 = arith.constant 0 : index
    %126 = vector.load %arg22[%c5_119, %c0_120] : memref<6x128xf32, #tpu.memory_space<vmem>>, vector<1x128xf32>
    tpu.vector_store %arg22[%c5_119, %c0_120], %124 {strides = array<i32>} : memref<6x128xf32, #tpu.memory_space<vmem>>, vector<1x128xf32>,
    %c1_121 = arith.constant 1 : index
    %c0_122 = arith.constant 0 : index
    %127 = vector.load %arg22[%c1_121, %c0_122] : memref<6x128xf32, #tpu.memory_space<vmem>>, vector<4x128xf32>
    tpu.vector_store %arg22[%c1_121, %c0_122], %123 {strides = array<i32>} : memref<6x128xf32, #tpu.memory_space<vmem>>, vector<4x128xf32>,
    %c0_123 = arith.constant 0 : index
    %c0_124 = arith.constant 0 : index
    %128 = vector.load %arg22[%c0_123, %c0_124] : memref<6x128xf32, #tpu.memory_space<vmem>>, vector<6x128xf32>
    %129 = arith.truncf %128 : vector<6x128xf32> to vector<6x128xbf16>
    %130 = vector.extract_strided_slice %129 {offsets = [0, 0], sizes = [4, 128], strides = [1, 1]} : vector<6x128xbf16> to vector<4x128xbf16>
    %c0_125 = arith.constant 0 : index
    %c0_126 = arith.constant 0 : index
    %c0_127 = arith.constant 0 : index
    %131 = vector.load %arg10[%c0_125, %c0_126, %c0_127] : memref<3x128x128xbf16, #tpu.memory_space<vmem>>, vector<1x128x128xbf16>
    %132 = vector.shape_cast %131 : vector<1x128x128xbf16> to vector<128x128xbf16>
    %cst_128 = arith.constant dense<0.000000e+00> : vector<4x128xf32>
    %133 = tpu.matmul %130, %132, %cst_128 {dimension_numbers = #tpu.dot_dimension_numbers<[1], [0], [0], [1], [0, 0, 1, 1], [], []>} : vector<4x128xbf16>, vector<128x128xbf16>, vector<4x128xf32> -> vector<4x128xf32>
    %134 = vector.extract_strided_slice %129 {offsets = [1, 0], sizes = [4, 128], strides = [1, 1]} : vector<6x128xbf16> to vector<4x128xbf16>
    %c1_129 = arith.constant 1 : index
    %c0_130 = arith.constant 0 : index
    %c0_131 = arith.constant 0 : index
    %135 = vector.load %arg10[%c1_129, %c0_130, %c0_131] : memref<3x128x128xbf16, #tpu.memory_space<vmem>>, vector<1x128x128xbf16>
    %136 = vector.shape_cast %135 : vector<1x128x128xbf16> to vector<128x128xbf16>
    %cst_132 = arith.constant dense<0.000000e+00> : vector<4x128xf32>
    %137 = tpu.matmul %134, %136, %cst_132 {dimension_numbers = #tpu.dot_dimension_numbers<[1], [0], [0], [1], [0, 0, 1, 1], [], []>} : vector<4x128xbf16>, vector<128x128xbf16>, vector<4x128xf32> -> vector<4x128xf32>
    %138 = arith.addf %133, %137 : vector<4x128xf32>
    %139 = vector.extract_strided_slice %129 {offsets = [2, 0], sizes = [4, 128], strides = [1, 1]} : vector<6x128xbf16> to vector<4x128xbf16>
    %c2_133 = arith.constant 2 : index
    %c0_134 = arith.constant 0 : index
    %c0_135 = arith.constant 0 : index
    %140 = vector.load %arg10[%c2_133, %c0_134, %c0_135] : memref<3x128x128xbf16, #tpu.memory_space<vmem>>, vector<1x128x128xbf16>
    %141 = vector.shape_cast %140 : vector<1x128x128xbf16> to vector<128x128xbf16>
    %cst_136 = arith.constant dense<0.000000e+00> : vector<4x128xf32>
    %142 = tpu.matmul %139, %141, %cst_136 {dimension_numbers = #tpu.dot_dimension_numbers<[1], [0], [0], [1], [0, 0, 1, 1], [], []>} : vector<4x128xbf16>, vector<128x128xbf16>, vector<4x128xf32> -> vector<4x128xf32>
    %143 = arith.addf %138, %142 : vector<4x128xf32>
    %c0_137 = arith.constant 0 : index
    %c0_138 = arith.constant 0 : index
    %144 = vector.load %arg11[%c0_137, %c0_138] : memref<1x128xf32, #tpu.memory_space<vmem>>, vector<1x128xf32>
    %145 = vector.broadcast %144 : vector<1x128xf32> to vector<4x128xf32>
    %146 = arith.addf %143, %145 : vector<4x128xf32>
    %cst_139 = arith.constant 0.000000e+00 : f32
    %147 = vector.broadcast %cst_139 : f32 to vector<4x128xf32>
    %148 = arith.maximumf %146, %147 : vector<4x128xf32>
    %cst_140 = arith.constant dense<0.000000e+00> : vector<128xf32>
    %149 = vector.multi_reduction <add>, %148, %cst_140 [0] : vector<4x128xf32> to vector<128xf32>
    %150 = vector.shape_cast %149 : vector<128xf32> to vector<1x128xf32>
    %c0_141 = arith.constant 0 : index
    %c0_142 = arith.constant 0 : index
    %151 = vector.load %arg16[%c0_141, %c0_142] : memref<128x10xf32, #tpu.memory_space<vmem>>, vector<128x10xf32>
    %cst_143 = arith.constant dense<0.000000e+00> : vector<1x10xf32>
    %152 = tpu.matmul %150, %151, %cst_143 {dimension_numbers = #tpu.dot_dimension_numbers<[1], [0], [0], [1], [0, 0, 1, 1], [], []>} : vector<1x128xf32>, vector<128x10xf32>, vector<1x10xf32> -> vector<1x10xf32>
    %c0_144 = arith.constant 0 : index
    %c0_145 = arith.constant 0 : index
    %153 = vector.load %arg17[%c0_144, %c0_145] : memref<1x10xf32, #tpu.memory_space<vmem>>, vector<1x10xf32>
    %154 = arith.addf %152, %153 : vector<1x10xf32>
    %c0_146 = arith.constant 0 : index
    %c0_147 = arith.constant 0 : index
    %c0_148 = arith.constant 0 : index
    %155 = vector.load %arg18[%c0_146, %c0_147, %c0_148] : memref<1x1x10xf32, #tpu.memory_space<vmem>>, vector<1x1x10xf32>
    %156 = vector.shape_cast %155 : vector<1x1x10xf32> to vector<1x10xf32>
    %157 = vector.shape_cast %154 : vector<1x10xf32> to vector<1x1x10xf32>
    tpu.vector_store %arg18[%c0_146, %c0_147, %c0_148], %157 {strides = array<i32>} : memref<1x1x10xf32, #tpu.memory_space<vmem>>, vector<1x1x10xf32>,
    return
  }
  func.func @transform_0(%arg0: i32) -> (i32, i32, i32) {
    %c0_i32 = arith.constant 0 : i32
    %c0_i32_0 = arith.constant 0 : i32
    %c0_i32_1 = arith.constant 0 : i32
    return %arg0, %c0_i32, %c0_i32_0 : i32, i32, i32
  }
  func.func @transform_1(%arg0: i32) -> (i32, i32, i32) {
    %c0_i32 = arith.constant 0 : i32
    %c0_i32_0 = arith.constant 0 : i32
    %c0_i32_1 = arith.constant 0 : i32
    %c0_i32_2 = arith.constant 0 : i32
    return %c0_i32, %c0_i32_0, %c0_i32_1 : i32, i32, i32
  }
  func.func @transform_2(%arg0: i32) -> (i32, i32) {
    %c0_i32 = arith.constant 0 : i32
    %c0_i32_0 = arith.constant 0 : i32
    %c0_i32_1 = arith.constant 0 : i32
    return %c0_i32, %c0_i32_0 : i32, i32
  }
  func.func @transform_3(%arg0: i32) -> (i32, i32, i32) {
    %c0_i32 = arith.constant 0 : i32
    %c0_i32_0 = arith.constant 0 : i32
    %c0_i32_1 = arith.constant 0 : i32
    %c0_i32_2 = arith.constant 0 : i32
    return %c0_i32, %c0_i32_0, %c0_i32_1 : i32, i32, i32
  }
  func.func @transform_4(%arg0: i32) -> (i32, i32) {
    %c0_i32 = arith.constant 0 : i32
    %c0_i32_0 = arith.constant 0 : i32
    %c0_i32_1 = arith.constant 0 : i32
    return %c0_i32, %c0_i32_0 : i32, i32
  }
  func.func @transform_5(%arg0: i32) -> (i32, i32, i32) {
    %c0_i32 = arith.constant 0 : i32
    %c0_i32_0 = arith.constant 0 : i32
    %c0_i32_1 = arith.constant 0 : i32
    %c0_i32_2 = arith.constant 0 : i32
    return %c0_i32, %c0_i32_0, %c0_i32_1 : i32, i32, i32
  }
  func.func @transform_6(%arg0: i32) -> (i32, i32) {
    %c0_i32 = arith.constant 0 : i32
    %c0_i32_0 = arith.constant 0 : i32
    %c0_i32_1 = arith.constant 0 : i32
    return %c0_i32, %c0_i32_0 : i32, i32
  }
  func.func @transform_7(%arg0: i32) -> (i32, i32, i32) {
    %c0_i32 = arith.constant 0 : i32
    %c0_i32_0 = arith.constant 0 : i32
    %c0_i32_1 = arith.constant 0 : i32
    %c0_i32_2 = arith.constant 0 : i32
    return %c0_i32, %c0_i32_0, %c0_i32_1 : i32, i32, i32
  }
  func.func @transform_8(%arg0: i32) -> (i32, i32) {
    %c0_i32 = arith.constant 0 : i32
    %c0_i32_0 = arith.constant 0 : i32
    %c0_i32_1 = arith.constant 0 : i32
    return %c0_i32, %c0_i32_0 : i32, i32
  }
  func.func @transform_9(%arg0: i32) -> (i32, i32, i32) {
    %c0_i32 = arith.constant 0 : i32
    %c0_i32_0 = arith.constant 0 : i32
    %c0_i32_1 = arith.constant 0 : i32
    %c0_i32_2 = arith.constant 0 : i32
    return %c0_i32, %c0_i32_0, %c0_i32_1 : i32, i32, i32
  }
  func.func @transform_10(%arg0: i32) -> (i32, i32) {
    %c0_i32 = arith.constant 0 : i32
    %c0_i32_0 = arith.constant 0 : i32
    %c0_i32_1 = arith.constant 0 : i32
    return %c0_i32, %c0_i32_0 : i32, i32
  }
  func.func @transform_11(%arg0: i32) -> (i32, i32, i32) {
    %c0_i32 = arith.constant 0 : i32
    %c0_i32_0 = arith.constant 0 : i32
    %c0_i32_1 = arith.constant 0 : i32
    %c0_i32_2 = arith.constant 0 : i32
    return %c0_i32, %c0_i32_0, %c0_i32_1 : i32, i32, i32
  }
  func.func @transform_12(%arg0: i32) -> (i32, i32, i32) {
    %c0_i32 = arith.constant 0 : i32
    %c0_i32_0 = arith.constant 0 : i32
    %c0_i32_1 = arith.constant 0 : i32
    %c0_i32_2 = arith.constant 0 : i32
    return %c0_i32, %c0_i32_0, %c0_i32_1 : i32, i32, i32
  }
  func.func @transform_13(%arg0: i32) -> (i32, i32, i32) {
    %c0_i32 = arith.constant 0 : i32
    %c0_i32_0 = arith.constant 0 : i32
    %c0_i32_1 = arith.constant 0 : i32
    %c0_i32_2 = arith.constant 0 : i32
    return %c0_i32, %c0_i32_0, %c0_i32_1 : i32, i32, i32
  }
  func.func @transform_14(%arg0: i32) -> (i32, i32, i32) {
    %c0_i32 = arith.constant 0 : i32
    %c0_i32_0 = arith.constant 0 : i32
    %c0_i32_1 = arith.constant 0 : i32
    %c0_i32_2 = arith.constant 0 : i32
    return %c0_i32, %c0_i32_0, %c0_i32_1 : i32, i32, i32
  }
  func.func @transform_15(%arg0: i32) -> (i32, i32) {
    %c0_i32 = arith.constant 0 : i32
    %c0_i32_0 = arith.constant 0 : i32
    %c0_i32_1 = arith.constant 0 : i32
    return %c0_i32, %c0_i32_0 : i32, i32
  }
  func.func @transform_16(%arg0: i32) -> (i32, i32) {
    %c0_i32 = arith.constant 0 : i32
    %c0_i32_0 = arith.constant 0 : i32
    %c0_i32_1 = arith.constant 0 : i32
    return %c0_i32, %c0_i32_0 : i32, i32
  }
  func.func @transform_17(%arg0: i32) -> (i32, i32, i32) {
    %c0_i32 = arith.constant 0 : i32
    %c0_i32_0 = arith.constant 0 : i32
    %c0_i32_1 = arith.constant 0 : i32
    return %arg0, %c0_i32, %c0_i32_0 : i32, i32, i32
  }
}

</mosaic_0001>

<bundles_post_ra>
// kernel: tile.33
= control target key start
LH: loop header
LB: loop body
LE: loop exit
PB: predicated region body
PF: predicated region fallthrough
CT: control target
= control target key end

     0   :  { %s28_s0 = inlined_call_operand.vmem [shape: f32[8], index: 0, kind: input, shape index: {}]   ;;  %s29_s1 = inlined_call_operand.vmem [shape: f32[16,8], index: 1, kind: output, shape index: {}]  }
   0x1   :  { %v4_v0 = vld [vmem:[%s28_s0] ss:$0 sm:$0xff] }
   0x2   :  { %5 = vst [vmem:[%s29_s1] sm:$0xff] %v4_v0  ;;  %8 = vst [vmem:[%s29_s1 + $0x8] sm:$0xff] %v4_v0 }

// kernel: tile.34
= control target key start
LH: loop header
LB: loop body
LE: loop exit
PB: predicated region body
PF: predicated region fallthrough
CT: control target
= control target key end

     0   :  { %s131_s10 = smov 120   ;;  %s132_s11 = smov 104   ;;  %vm3_vm0 = vcmask 64512   ;;  %vm9_vm1 = vcmask 1048512   ;;  %vm15_vm2 = vcmask 982912   ;;  %vm21_vm3 = vcmask 917312   ;;  %s207_s0 = inlined_call_operand.vmem [shape: f32[16,8], index: 0, kind: input, shape index: {}]   ;;  %s208_s1 = inlined_call_operand.vmem [shape: f32[1,128], index: 1, kind: output, shape index: {}]  }
   0x1   :  { %v101_v0 = vld [vmem:[%s207_s0 + $0xf] sm:$0x1]   ;;  %v103_v1 = vld [vmem:[%s207_s0 + $0xd] sm:$0x1]   ;;  %v102_v2 = vld [vmem:[%s207_s0 + $0xe] sm:$0x1]  }
   0x2   :  { %7 = vrot.lane.b32.xlu0 %v101_v0, %s131_s10  ;;  %19 = vrot.lane.b32.xlu1 %v103_v1, %s132_s11  ;;  %v104_v3 = vld [vmem:[%s207_s0 + $0xc] sm:$0x1]   ;;  %s133_s16 = smov 112   ;;  %s134_s17 = smov 96   ;;  %v105_v4 = vld [vmem:[%s207_s0 + $0xb] sm:$0x1]  }
   0x3   :  { %v106_v5 = vld [vmem:[%s207_s0 + $0xa] sm:$0x1]   ;;  %v2_v6 = vld [vmem:[%s207_s0] sm:$0x1]   ;;  %s135_s24 = smov 88   ;;  %s136_s25 = smov 80  }
   0x4   :  { %4 = vst.msk [vmem:[#allocation0] sm:$0x1] %vm3_vm0, %v2_v6   ;;  %v107_v7 = vld [vmem:[%s207_s0 + $0x9] sm:$0x1]   ;;  %v108_v8 = vld [vmem:[%s207_s0 + $0x8] sm:$0x1]  }
   0x5   :  { %s137_s30 = smov 72   ;;  %s138_s2 = smov 64   ;;  %v109_v9 = vld [vmem:[%s207_s0 + $0x7] sm:$0x1]   ;;  %v110_v10 = vld [vmem:[%s207_s0 + $0x6] sm:$0x1]  }
   0x6   :  { %13 = vrot.lane.b32.xlu0 %v102_v2, %s133_s16  ;;  %25 = vrot.lane.b32.xlu1 %v104_v3, %s134_s17  ;;  %s139_s7 = smov 56   ;;  %s140_s8 = smov 48   ;;  %v111_v11 = vld [vmem:[%s207_s0 + $0x5] sm:$0x1]   ;;  %v112_v12 = vld [vmem:[%s207_s0 + $0x4] sm:$0x1]  }
   0x7   :  { %s141_s13 = smov 40   ;;  %s142_s14 = smov 32   ;;  %v113_v13 = vld [vmem:[%s207_s0 + $0x3] sm:$0x1]   ;;  %v114_v14 = vld [vmem:[%s207_s0 + $0x2] sm:$0x1]  }
   0x8   :  { %s143_s19 = smov 24   ;;  %s144_s20 = smov 16   ;;  %v115_v15 = vld [vmem:[%s207_s0 + $0x1] sm:$0x1]   ;;  %vm27_vm4 = vcmask 851712   ;;  %vm33_vm5 = vcmask 786112  }
   0x9   :  { %s145_s0 = smov 8   ;;  %vm39_vm6 = vcmask 720512   ;;  %vm45_vm7 = vcmask 654912   ;;  %vm51_vm8 = vcmask 589312   ;;  %vm57_vm9 = vcmask 523712  }
   0xa   :  { %31 = vrot.lane.b32.xlu0 %v105_v4, %s135_s24  ;;  %37 = vrot.lane.b32.xlu1 %v106_v5, %s136_s25  ;;  %vm63_vm10 = vcmask 458112   ;;  %vm69_vm11 = vcmask 392512   ;;  %vm75_vm12 = vcmask 326912   ;;  %vm81_vm13 = vcmask 261312  }
   0xb   :  { %vm87_vm14 = vcmask 195712   ;;  %vm93_vm15 = vcmask 130112  }
   0xe   :  { %43 = vrot.lane.b32.xlu0 %v107_v7, %s137_s30  ;;  %49 = vrot.lane.b32.xlu1 %v108_v8, %s138_s2 }
  0x12   :  { %55 = vrot.lane.b32.xlu0 %v109_v9, %s139_s7  ;;  %61 = vrot.lane.b32.xlu1 %v110_v10, %s140_s8 }
  0x16   :  { %67 = vrot.lane.b32.xlu0 %v111_v11, %s141_s13  ;;  %73 = vrot.lane.b32.xlu1 %v112_v12, %s142_s14 }
  0x1a   :  { %79 = vrot.lane.b32.xlu0 %v113_v13, %s143_s19  ;;  %85 = vrot.lane.b32.xlu1 %v114_v14, %s144_s20 }
  0x1e   :  { %91 = vrot.lane.b32.xlu0 %v115_v15, %s145_s0 }
  0x74   :  { %v8_v16 = vpop.permute.xlu0 %7   ;;  %v20_v17 = vpop.permute.xlu1 %19  }
  0x75   :  { %10 = vst.msk [vmem:[#allocation0] sm:$0x1] %vm9_vm1, %v8_v16  }
  0x78   :  { %v14_v18 = vpop.permute.xlu0 %13   ;;  %v26_v19 = vpop.permute.xlu1 %25  }
  0x79   :  { %16 = vst.msk [vmem:[#allocation0] sm:$0x1] %vm15_vm2, %v14_v18  }
  0x7a   :  { %22 = vst.msk [vmem:[#allocation0] sm:$0x1] %vm21_vm3, %v20_v17  }
  0x7b   :  { %28 = vst.msk [vmem:[#allocation0] sm:$0x1] %vm27_vm4, %v26_v19  }
  0x7c   :  { %v32_v20 = vpop.permute.xlu0 %31   ;;  %v38_v21 = vpop.permute.xlu1 %37  }
  0x7d   :  { %34 = vst.msk [vmem:[#allocation0] sm:$0x1] %vm33_vm5, %v32_v20  }
  0x7e   :  { %40 = vst.msk [vmem:[#allocation0] sm:$0x1] %vm39_vm6, %v38_v21  }
  0x80   :  { %v44_v22 = vpop.permute.xlu0 %43   ;;  %v50_v23 = vpop.permute.xlu1 %49  }
  0x81   :  { %46 = vst.msk [vmem:[#allocation0] sm:$0x1] %vm45_vm7, %v44_v22  }
  0x82   :  { %52 = vst.msk [vmem:[#allocation0] sm:$0x1] %vm51_vm8, %v50_v23  }
  0x84   :  { %v56_v24 = vpop.permute.xlu0 %55   ;;  %v62_v25 = vpop.permute.xlu1 %61  }
  0x85   :  { %58 = vst.msk [vmem:[#allocation0] sm:$0x1] %vm57_vm9, %v56_v24  }
  0x86   :  { %64 = vst.msk [vmem:[#allocation0] sm:$0x1] %vm63_vm10, %v62_v25  }
  0x88   :  { %v68_v26 = vpop.permute.xlu0 %67   ;;  %v74_v27 = vpop.permute.xlu1 %73  }
  0x89   :  { %70 = vst.msk [vmem:[#allocation0] sm:$0x1] %vm69_vm11, %v68_v26  }
  0x8a   :  { %76 = vst.msk [vmem:[#allocation0] sm:$0x1] %vm75_vm12, %v74_v27  }
  0x8c   :  { %v80_v28 = vpop.permute.xlu0 %79   ;;  %v86_v29 = vpop.permute.xlu1 %85  }
  0x8d   :  { %82 = vst.msk [vmem:[#allocation0] sm:$0x1] %vm81_vm13, %v80_v28  }
  0x8e   :  { %88 = vst.msk [vmem:[#allocation0] sm:$0x1] %vm87_vm14, %v86_v29  }
  0x90   :  { %v92_v30 = vpop.permute.xlu0 %91  }
  0x91   :  { %94 = vst.msk [vmem:[#allocation0] sm:$0x1] %vm93_vm15, %v92_v30  }
  0x98   :  { %v98_v31 = vld [vmem:[#allocation0] sm:$0x1] }
  0x99   :  { %100 = vst [vmem:[%s208_s1] sm:$0x1] %v98_v31 }

// kernel: tile.38
= control target key start
LH: loop header
LB: loop body
LE: loop exit
PB: predicated region body
PF: predicated region fallthrough
CT: control target
= control target key end

     0   :  { %s22_s0 = inlined_call_operand.vmem [shape: f32[16], index: 0, kind: input, shape index: {}]   ;;  %s23_s1 = inlined_call_operand.vmem [shape: f32[8,16], index: 1, kind: output, shape index: {}]  }
   0x1   :  { %v4_v0 = vld [vmem:[%s22_s0] ss:$0 sm:$0xff] }
   0x2   :  { %5 = vst [vmem:[%s23_s1] sm:$0xff] %v4_v0 }

// kernel: tile.39
= control target key start
LH: loop header
LB: loop body
LE: loop exit
PB: predicated region body
PF: predicated region fallthrough
CT: control target
= control target key end

     0   :  { %s67_s10 = smov 112   ;;  %s68_s11 = smov 80   ;;  %vm3_vm0 = vcmask 130048   ;;  %vm9_vm1 = vcmask 1048448   ;;  %vm15_vm2 = vcmask 917248   ;;  %vm21_vm3 = vcmask 786048   ;;  %s111_s0 = inlined_call_operand.vmem [shape: f32[8,16], index: 0, kind: input, shape index: {}]   ;;  %s112_s1 = inlined_call_operand.vmem [shape: f32[1,128], index: 1, kind: output, shape index: {}]  }
   0x1   :  { %v53_v0 = vld [vmem:[%s111_s0 + $0x7] sm:$0x1]   ;;  %v55_v1 = vld [vmem:[%s111_s0 + $0x5] sm:$0x1]   ;;  %v54_v2 = vld [vmem:[%s111_s0 + $0x6] sm:$0x1]  }
   0x2   :  { %7 = vrot.lane.b32.xlu0 %v53_v0, %s67_s10  ;;  %19 = vrot.lane.b32.xlu1 %v55_v1, %s68_s11  ;;  %v56_v3 = vld [vmem:[%s111_s0 + $0x4] sm:$0x1]   ;;  %v2_v4 = vld [vmem:[%s111_s0] sm:$0x1]   ;;  %s69_s18 = smov 96   ;;  %s70_s19 = smov 64  }
   0x3   :  { %4 = vst.msk [vmem:[#allocation0] sm:$0x1] %vm3_vm0, %v2_v4   ;;  %v57_v5 = vld [vmem:[%s111_s0 + $0x3] sm:$0x1]   ;;  %v58_v6 = vld [vmem:[%s111_s0 + $0x2] sm:$0x1]  }
   0x4   :  { %s71_s24 = smov 48   ;;  %s72_s25 = smov 32   ;;  %v59_v7 = vld [vmem:[%s111_s0 + $0x1] sm:$0x1]   ;;  %vm27_vm4 = vcmask 654848   ;;  %vm33_vm5 = vcmask 523648  }
   0x5   :  { %s73_s0 = smov 16   ;;  %vm39_vm6 = vcmask 392448   ;;  %vm45_vm7 = vcmask 261248  }
   0x6   :  { %13 = vrot.lane.b32.xlu0 %v54_v2, %s69_s18  ;;  %25 = vrot.lane.b32.xlu1 %v56_v3, %s70_s19 }
   0xa   :  { %31 = vrot.lane.b32.xlu0 %v57_v5, %s71_s24  ;;  %37 = vrot.lane.b32.xlu1 %v58_v6, %s72_s25 }
   0xe   :  { %43 = vrot.lane.b32.xlu0 %v59_v7, %s73_s0 }
  0x74   :  { %v8_v8 = vpop.permute.xlu0 %7   ;;  %v20_v9 = vpop.permute.xlu1 %19  }
  0x75   :  { %10 = vst.msk [vmem:[#allocation0] sm:$0x1] %vm9_vm1, %v8_v8  }
  0x78   :  { %v14_v10 = vpop.permute.xlu0 %13   ;;  %v26_v11 = vpop.permute.xlu1 %25  }
  0x79   :  { %16 = vst.msk [vmem:[#allocation0] sm:$0x1] %vm15_vm2, %v14_v10  }
  0x7a   :  { %22 = vst.msk [vmem:[#allocation0] sm:$0x1] %vm21_vm3, %v20_v9  }
  0x7b   :  { %28 = vst.msk [vmem:[#allocation0] sm:$0x1] %vm27_vm4, %v26_v11  }
  0x7c   :  { %v32_v12 = vpop.permute.xlu0 %31   ;;  %v38_v13 = vpop.permute.xlu1 %37  }
  0x7d   :  { %34 = vst.msk [vmem:[#allocation0] sm:$0x1] %vm33_vm5, %v32_v12  }
  0x7e   :  { %40 = vst.msk [vmem:[#allocation0] sm:$0x1] %vm39_vm6, %v38_v13  }
  0x80   :  { %v44_v14 = vpop.permute.xlu0 %43  }
  0x81   :  { %46 = vst.msk [vmem:[#allocation0] sm:$0x1] %vm45_vm7, %v44_v14  }
  0x88   :  { %v50_v15 = vld [vmem:[#allocation0] sm:$0x1] }
  0x89   :  { %52 = vst [vmem:[%s112_s1] sm:$0x1] %v50_v15 }

// kernel: tile.43
= control target key start
LH: loop header
LB: loop body
LE: loop exit
PB: predicated region body
PF: predicated region fallthrough
CT: control target
= control target key end

     0   :  { %s22_s0 = inlined_call_operand.vmem [shape: f32[32], index: 0, kind: input, shape index: {}]   ;;  %s23_s1 = inlined_call_operand.vmem [shape: f32[4,32], index: 1, kind: output, shape index: {}]  }
   0x1   :  { %v4_v0 = vld [vmem:[%s22_s0] ss:$0 sm:$0xff] }
   0x2   :  { %5 = vst [vmem:[%s23_s1] sm:$0xf] %v4_v0 }

// kernel: tile.44
= control target key start
LH: loop header
LB: loop body
LE: loop exit
PB: predicated region body
PF: predicated region fallthrough
CT: control target
= control target key end

     0   :  { %vm7_vm0 = vcmask 261120   ;;  %s37_s8 = smov 32   ;;  %s38_s9 = smov 64   ;;  %vm13_vm1 = vcmask 1048320   ;;  %vm19_vm2 = vcmask 785920   ;;  %vm25_vm3 = vcmask 523520   ;;  %s55_s0 = inlined_call_operand.vmem [shape: f32[4,32], index: 0, kind: input, shape index: {}]   ;;  %s56_s1 = inlined_call_operand.vmem [shape: f32[1,128], index: 1, kind: output, shape index: {}]  }
   0x1   :  { %v4_v0 = vld [vmem:[%s55_s0] sm:$0xf]  ;;  %s36_s0 = smov 96  }
   0x2   :  { %5 = vst [vmem:[#allocation1] sm:$0xf] %v4_v0 }
   0x9   :  { %v10_v1 = vld [vmem:[#allocation1 + $0x3] sm:$0x1]   ;;  %v22_v2 = vld [vmem:[#allocation1 + $0x1] sm:$0x1]   ;;  %v6_v3 = vld [vmem:[#allocation1] sm:$0x1]  }
   0xa   :  { %11 = vrot.lane.b32.xlu0 %v10_v1, %s36_s0  ;;  %23 = vrot.lane.b32.xlu1 %v22_v2, %s37_s8  ;;  %v16_v4 = vld [vmem:[#allocation1 + $0x2] sm:$0x1]   ;;  %8 = vst.msk [vmem:[#allocation0] sm:$0x1] %vm7_vm0, %v6_v3  }
   0xe   :  { %17 = vrot.lane.b32.xlu0 %v16_v4, %s38_s9 }
  0x7c   :  { %v12_v5 = vpop.permute.xlu0 %11   ;;  %v24_v6 = vpop.permute.xlu1 %23  }
  0x7d   :  { %14 = vst.msk [vmem:[#allocation0] sm:$0x1] %vm13_vm1, %v12_v5  }
  0x80   :  { %v18_v7 = vpop.permute.xlu0 %17  }
  0x81   :  { %20 = vst.msk [vmem:[#allocation0] sm:$0x1] %vm19_vm2, %v18_v7  }
  0x82   :  { %26 = vst.msk [vmem:[#allocation0] sm:$0x1] %vm25_vm3, %v24_v6  }
  0x89   :  { %v30_v8 = vld [vmem:[#allocation0] sm:$0x1] }
  0x8a   :  { %32 = vst [vmem:[%s56_s1] sm:$0x1] %v30_v8 }

// kernel: cnn_forward.1
= control target key start
LH: loop header
LB: loop body
LE: loop exit
PB: predicated region body
PF: predicated region fallthrough
CT: control target
= control target key end

     0   :  { %s4924_s0 = inlined_call_operand.vmem [shape: bf16[2,18,64], index: 0, kind: input, shape index: {}]   ;;  %s4925_s1 = inlined_call_operand.vmem [shape: bf16[3,64,128], index: 1, kind: input, shape index: {}]   ;;  %s4926_s2 = inlined_call_operand.vmem [shape: f32[1,128], index: 2, kind: input, shape index: {}]   ;;  %s4927_s3 = inlined_call_operand.vmem [shape: bf16[3,64,128], index: 3, kind: input, shape index: {}]   ;;  %s4928_s4 = inlined_call_operand.vmem [shape: f32[1,128], index: 4, kind: input, shape index: {}]   ;;  %s4929_s5 = inlined_call_operand.vmem [shape: bf16[3,64,128], index: 5, kind: input, shape index: {}]   ;;  %s4930_s6 = inlined_call_operand.vmem [shape: f32[1,128], index: 6, kind: input, shape index: {}]   ;;  %s4931_s7 = inlined_call_operand.vmem [shape: bf16[3,128,128], index: 7, kind: input, shape index: {}]   ;;  %s4932_s8 = inlined_call_operand.vmem [shape: f32[1,128], index: 8, kind: input, shape index: {}]   ;;  %s4933_s9 = inlined_call_operand.vmem [shape: bf16[3,128,128], index: 9, kind: input, shape index: {}]   ;;  %s4934_s10 = inlined_call_operand.vmem [shape: f32[1,128], index: 10, kind: input, shape index: {}]   ;;  %s4935_s11 = inlined_call_operand.vmem [shape: f32[2,8,16], index: 11, kind: input, shape index: {}]   ;;  %s4936_s12 = inlined_call_operand.vmem [shape: f32[2,128,64], index: 12, kind: input, shape index: {}]   ;;  %s4937_s13 = inlined_call_operand.vmem [shape: f32[2,4,8], index: 13, kind: input, shape index: {}]   ;;  %s4938_s14 = inlined_call_operand.vmem [shape: f32[2,128,64], index: 14, kind: input, shape index: {}]   ;;  %s4939_s15 = inlined_call_operand.vmem [shape: f32[128,10], index: 15, kind: input, shape index: {}]   ;;  %s4940_s16 = inlined_call_operand.vmem [shape: f32[1,10], index: 16, kind: input, shape index: {}]   ;;  %s4941_s17 = inlined_call_operand.hbm [shape: f32[2,1,10], index: 17, kind: output, shape index: {}]  }
   0x1   :  { %4950 = sst [smem:[#allocation15_spill]] %s4924_s0 }
   0x2   :  { %4951 = sst [smem:[#allocation16_spill]] %s4925_s1 }
   0x3   :  { %4952 = sst [smem:[#allocation17_spill]] %s4941_s17 }
   0x4   :  { %22 = vsyncpa [#allocation7], 0 }
   0x5   :  { %24 = vsyncpa [#allocation7 + $0x1], 0  ;;  %s4108_s24 = smov 0   ;;  %s4110_s25 = smov 0  }
   0x6   :  { %s4112_s26 = smov 0   ;;  %s4114_s27 = smov 0  }
   0x7 LB: > { %4953 = sst [smem:[#allocation9_spill]] %s4000_s24  ;;  %s4129_s28 = sadd.s32 4294967295, %s4012_s27   ;;  %s4012_s27 = sphi %s4114_s27, %s4967_s27   ;;  %s4008_s26 = sphi %s4112_s26, %s4969_s26   ;;  %s4004_s25 = sphi %s4110_s25, %s4971_s25   ;;  %s4000_s24 = sphi %s4108_s24, %s4970_s24  }
   0x8   : > { %4954 = sst [smem:[#allocation10_spill]] %s4008_s26  ;;  %s2816_s29 = sadd.s32 4294967294, %s4012_s27  }
   0x9   : > { %4955 = sst [smem:[#allocation11_spill]] %s4012_s27  ;;  %s4133_s0 = sadd.s32 1, %s4012_s27  }
   0xa   : > { %4956 = sst [smem:[#allocation12_spill]] %s4133_s0  ;;  %s399_s30 = sadd.s32 1, %s4008_s26 }
   0xb   : > { %s396_s18 = ssub.s32 %s4012_s27, %s4133_s0  ;;  %p409_p0 = scmp.ne.s32.totalorder %s4008_s26, %s4004_s25 }
   0xc   : > { %p397_p1 = scmp.eq.s32.totalorder %s396_s18, 0  ;;  %p410_p2 = scmp.eq.s32.totalorder %s4129_s28, 1 }
   0xd   : > { %p415_p3 = scmp.ne.s32.totalorder %s4004_s25, %s4000_s24  ;;  %p416_p4 = scmp.eq.s32.totalorder %s2816_s29, 1 }
   0xe   : > { %s4144_s19 = scalar_select %p397_p1, %s4008_s26, %s399_s30  }
   0xf   : > { %p4146_p5 = por %p410_p2, %p409_p0  ;;  %p4150_p6 = por %p416_p4, %p415_p3 }
  0x10   : > { %4957 = sst [smem:[#allocation13_spill]] %s4144_s19  ;;  %p2819_p7 = scmp.ge.s32.totalorder %s4012_s27, 1 }
  0x11   : > { %s4959_s20 = scalar_select %p4150_p6, 1, 0 }
  0x12   : > { %p490_p8 = scmp.lt.s32.totalorder %s4012_s27, 3 }
  0x13   : > { %4960 = sst [smem:[#allocation14_spill]] %s4959_s20 }
  0x14   : > { %p491_p9 = pnand %p2819_p7, %p490_p8 }
  0x15   : > { %s4961_s23 = sld [smem:[#allocation16_spill]] (!%p491_p9)  ;;  %v4014_v1 = vmov (!%p491_p9), 0.0   ;;  %vm4015_vm0 = vmmov (!%p491_p9), 0   ;;  %p541_p10 = scmp.lt.s32.totalorder (!%p491_p9), %s4129_s28, 1  ;;  %vm575_vm1 = vsmask.f32 (!%p491_p9), 7424 }
  0x16   : > { %494 = sbr.rel (%p491_p9) target bundleno = 2418 (0x972), region = 88  ;;  %3268 = vmatprep.subr.bf16.mxu0 (!%p491_p9), %v4014_v1  ;;  %1971 = vst [vmem:[#allocation4] sm:$0x1] (!%p491_p9), %v4014_v1  ;;  %1972 = vst [vmem:[#allocation4 + $0x5] sm:$0x1] (!%p491_p9), %v4014_v1  ;;  %3280 = vmatprep.subr.bf16.mxu1 (!%p491_p9), %v4014_v1  ;;  %s4962_s27 = sld [smem:[#allocation15_spill]] (!%p491_p9) }
  0x17   : > { %2311 = vst [vmem:[#allocation5] sm:$0x1] (!%p491_p9), %v4014_v1  ;;  %2312 = vst [vmem:[#allocation5 + $0x5] sm:$0x1] (!%p491_p9), %v4014_v1  ;;  %3276 = vmatprep.mubr.msk.bf16.mxu0 (!%p491_p9), %vm4015_vm0, %v4014_v1  ;;  %3288 = vmatprep.mubr.msk.bf16.mxu1 (!%p491_p9), %vm4015_vm0, %v4014_v1  ;;  %vm612_vm2 = vcmask (!%p491_p9), 523264   ;;  %vm733_vm3 = vcmask (!%p491_p9), 1046528  }
  0x18   : > { %v4016_v25 = vmov (!%p491_p9), 0.0|0.0   ;;  %v2854_v37 = vld [vmem:[%s4926_s2] ss:$0 sm:$0xff] (!%p491_p9)  ;;  %v970_v48 = vld [vmem:[%s4936_s12 + $0x8] sm:$0xff] (!%p491_p9)  ;;  %vm819_vm4 = vcmask (!%p491_p9), 130048   ;;  %v971_v56 = vld [vmem:[%s4936_s12 + $0x10] sm:$0xff] (!%p491_p9) }
  0x19   : > { %v969_v47 = vld [vmem:[%s4936_s12] sm:$0xff] (!%p491_p9)  ;;  %v2859_v50 = vld [vmem:[%s4936_s12 + $0x88] sm:$0xff] (!%p491_p9)  ;;  %v972_v57 = vld [vmem:[%s4936_s12 + $0x18] sm:$0xff] (!%p491_p9)  ;;  %vm1143_vm5 = vcmask (!%p491_p9), 516096   ;;  %vm1396_vm6 = vcmask (!%p491_p9), 64512   ;;  %vm1722_vm7 = vcmask (!%p491_p9), 519168  }
  0x1a   : > { %v2858_v49 = vld [vmem:[%s4936_s12 + $0x80] sm:$0xff] (!%p491_p9)  ;;  %v2856_v53 = vld [vmem:[%s4935_s11 + $0x8] sm:$0xff] (!%p491_p9)  ;;  %v3702_v54 = vpack.c.bf16 (!%p491_p9), %v970_v48, %v969_v47  ;;  %v2860_v58 = vld [vmem:[%s4936_s12 + $0x90] sm:$0xff] (!%p491_p9)  ;;  %v3705_v60 = vpack.c.bf16 (!%p491_p9), %v972_v57, %v971_v56  ;;  %1144 = vst.msk [vmem:[#allocation2] sm:$0x1] (!%p491_p9), %vm1143_vm5, %v4014_v1  ;;  %vm2651_vm8 = vcmask (!%p491_p9), 1043456  }
  0x1b   : > { %v3864_v0 = vld [vmem:[%s4961_s23 + $0x20] sm:$0xff] (!%p491_p9)   ;;  %v3866_v3 = vld [vmem:[%s4961_s23 + $0x28] sm:$0xff] (!%p491_p9)   ;;  %v3868_v5 = vld [vmem:[%s4961_s23 + $0x30] sm:$0xff] (!%p491_p9)   ;;  %v3726_v55 = vpack.c.bf16 (!%p491_p9), %v2859_v50, %v2858_v49  ;;  %1145 = vst.msk [vmem:[#allocation2 + $0x9] sm:$0x1] (!%p491_p9), %vm1143_vm5, %v4014_v1  ;;  %s539_s18 = sand.u32 (!%p491_p9), 1, %s4004_s25  }
  0x1c   : > { %v3865_v2 = vld [vmem:[%s4961_s23] sm:$0xff] (!%p491_p9)   ;;  %3269 = vmatpush3.bf16.msra.mxu0 (!%p491_p9), %v3864_v0  ;;  %v3867_v4 = vld [vmem:[%s4961_s23 + $0x8] sm:$0xff] (!%p491_p9)   ;;  %v3869_v6 = vld [vmem:[%s4961_s23 + $0x10] sm:$0xff] (!%p491_p9)   ;;  %1720 = vst.msk [vmem:[#allocation3] sm:$0x1] (!%p491_p9), %vm1143_vm5, %v4014_v1  ;;  %s3071_s22 = sshll.u32 (!%p491_p9), %s4129_s28, 4 }
  0x1d   : > { %3281 = vmatpush3.bf16.msra.mxu1 %v3865_v2  ;;  %3270 = vmatprep.subr.bf16.mxu0 %v4014_v1  ;;  %s542_s29 = scalar_select %p541_p10, %s4129_s28, 1  ;;  %v3870_v7 = vld [vmem:[%s4961_s23 + $0x38] sm:$0xff]   ;;  %v3874_v16 = vld [vmem:[%s4961_s23 + $0x40] sm:$0xff]   ;;  %v3875_v21 = vld [vmem:[%s4961_s23 + $0x48] sm:$0xff]   ;;  %1721 = vst.msk [vmem:[#allocation3 + $0x5] sm:$0x1] %vm1143_vm5, %v4014_v1 }
  0x1e   : > { %3282 = vmatprep.subr.bf16.mxu1 %v4014_v1  ;;  %v3871_v8 = vld [vmem:[%s4961_s23 + $0x18] sm:$0xff]   ;;  %v3876_v22 = vld [vmem:[%s4961_s23 + $0x50] sm:$0xff]   ;;  %v818_v52 = vld [vmem:[%s4935_s11] sm:$0xff]  ;;  %s540_s30 = scalar_lea.vmem [#allocation6], %s539_s18  ;;  %vm2746_vm9 = vcmask 73728   ;;  %s2749_s0 = scalar_lea.sflag [#allocation7], %s539_s18 }
  0x1f   : > { %s3821_s21 = smul.u32 12, %s542_s29  ;;  %v3877_v23 = vld [vmem:[%s4961_s23 + $0x58] sm:$0xff]   ;;  %v973_v62 = vld [vmem:[%s4936_s12 + $0x20] sm:$0xff]  ;;  %v974_v63 = vld [vmem:[%s4936_s12 + $0x28] sm:$0xff]  ;;  %s2761_s29 = sshll.u32 %s540_s30, 4  ;;  %s4884_s29 = int_to_ptr.vmem [resolvable:$true] %s2761_s29 }
  0x20   : > { %3271 = vmatpush3.bf16.msra.mxu0 %v3866_v3  ;;  %v2861_v59 = vld [vmem:[%s4936_s12 + $0x98] sm:$0xff]  ;;  %v2862_v0 = vld [vmem:[%s4936_s12 + $0xa0] sm:$0xff]  ;;  %v2863_v2 = vld [vmem:[%s4936_s12 + $0xa8] sm:$0xff]  ;;  %v3708_v3 = vpack.c.bf16 %v974_v63, %v973_v62  ;;  %s3950_s20 = scalar_lea.vmem %s4884_s29, 16  ;;  %s4017_s28 = smov [#allocation6]  }
  0x21   : > { %3283 = vmatpush3.bf16.msra.mxu1 %v3867_v4  ;;  %3272 = vmatprep.subr.bf16.mxu0 %v4014_v1  ;;  %s545_s17 = scalar_lea.vmem %s4962_s27, %s3821_s21  ;;  %v3729_v61 = vpack.c.bf16 %v2861_v59, %v2860_v58  ;;  %v3732_v4 = vpack.c.bf16 %v2863_v2, %v2862_v0  ;;  %v3884_v47 = vld [vmem:[%s4927_s3 + $0x30] sm:$0xff]   ;;  %v3885_v48 = vld [vmem:[%s4927_s3 + $0x38] sm:$0xff]   ;;  %v3887_v62 = vld [vmem:[%s4927_s3 + $0x48] sm:$0xff]   ;;  %p3951_p11 = scmp.ne.s32.totalorder %s4884_s29, %s3950_s20 }
  0x22   : > { %3284 = vmatprep.subr.bf16.mxu1 %v4014_v1  ;;  %v3872_v9 = vld [vmem:[%s545_s17] sm:$0xff]   ;;  %v3873_v10 = vld [vmem:[%s545_s17 + $0x8] ss:$0 sps:$4 sm:$0x11]   ;;  %v3888_v63 = vld [vmem:[%s4927_s3 + $0x50] sm:$0xff]   ;;  %s4963_s17 = sld [smem:[#allocation17_spill]] }
  0x23   : > { %v577_v11 = vshrl.u32 %v3872_v9, 16  ;;  %v579_v12 = vshll.u32 %v3872_v9, 16  ;;  %v584_v13 = vshll.u32 %v3873_v10, 16  ;;  %v734_v17 = vrot.slane %v3872_v9, 1  ;;  %v3889_v0 = vld [vmem:[%s4927_s3 + $0x58] sm:$0xff]   ;;  %p3952_p12 = pnand %p3951_p11, %p4146_p5  ;;  %s3954_s21 = sshll.u32 %s4017_s28, 4  ;;  %s3955_s21 = int_to_ptr.vmem [resolvable:$false] %s3954_s21 }
  0x24   : > { %3273 = vmatpush3.bf16.msra.mxu0 %v3868_v5  ;;  %v735_v18 = vrot.slane %v3873_v10, 1  ;;  %v975_v5 = vld [vmem:[%s4936_s12 + $0x30] sm:$0xff]  ;;  %s3956_s19 = scalar_lea.vmem %s3955_s21, 32  ;;  %p3957_p0 = scmp.lt.s32.totalorder %s4884_s29, %s3955_s21 }
  0x25   : > { %3285 = vmatpush3.bf16.msra.mxu1 %v3869_v6  ;;  %3274 = vmatprep.subr.bf16.mxu0 %v4014_v1  ;;  %v581_v14 = vrot.slane %v579_v12, 1  ;;  %v586_v15 = vrot.slane %v584_v13, 1  ;;  %v976_v6 = vld [vmem:[%s4936_s12 + $0x38] sm:$0xff]  ;;  %v978_v12 = vld [vmem:[%s4936_s12 + $0x48] sm:$0xff]  ;;  %v2866_v13 = vld [vmem:[%s4936_s12 + $0xc0] sm:$0xff]  ;;  %p3953_p13 = pneg %p3952_p12  ;;  %p3958_p1 = scmp.lt.s32.totalorder %s3956_s19, %s3950_s20 }
  0x26   : > { %3286 = vmatprep.subr.bf16.mxu1 %v4014_v1  ;;  %v736_v24 = vsel %vm733_vm3, %v734_v17, %v735_v18  ;;  %v979_v17 = vld [vmem:[%s4936_s12 + $0x50] sm:$0xff]  ;;  %v980_v18 = vld [vmem:[%s4936_s12 + $0x58] sm:$0xff] }
  0x27   : > { %v582_v19 = vor.u32 %v581_v14, %v577_v11  ;;  %v977_v11 = vld [vmem:[%s4936_s12 + $0x40] sm:$0xff]  ;;  %v2867_v14 = vld [vmem:[%s4936_s12 + $0xc8] sm:$0xff]  ;;  %p3959_p2 = por %p3958_p1, %p3957_p0 }
  0x28   : > { %3275 = vmatpush3.bf16.msra.mxu0 %v3870_v7  ;;  %v2864_v7 = vld [vmem:[%s4936_s12 + $0xb0] sm:$0xff]  ;;  %s4882_s27 = scalar_lea.hbm %s4963_s17, %s3071_s22 }
  0x29   : > { %3287 = vmatpush3.bf16.msra.mxu1 %v3871_v8  ;;  %3292 = vmatprep.subr.bf16.mxu0 %v4014_v1  ;;  %v587_v20 = vsel %vm575_vm1, %v582_v19, %v586_v15  ;;  %v2865_v8 = vld [vmem:[%s4936_s12 + $0xb8] sm:$0xff]  ;;  %v3714_v15 = vpack.c.bf16 %v978_v12, %v977_v11  ;;  %v2868_v19 = vld [vmem:[%s4936_s12 + $0xd0] sm:$0xff]  ;;  %p3960_p3 = pnand %p3959_p2, %p3953_p13 }
  0x2a   : > { %3698 = vmatprep.subr.bf16.mxu1 %v4016_v25  ;;  %v3735_v10 = vpack.c.bf16 %v2865_v8, %v2864_v7  ;;  %v2912_v7 = vld [vmem:[%s4938_s14 + $0x98] sm:$0xff]  ;;  %v2915_v12 = vld [vmem:[%s4938_s14 + $0xb0] sm:$0xff] }
  0x2b   : > { %3277 = vmatmul.mubr.msk.bf16.vlgmr.msra.gmra.mrb[0].mxu0 %vm612_vm2, %v587_v20  ;;  %v2869_v20 = vld [vmem:[%s4936_s12 + $0xd8] sm:$0xff] }
  0x2c   : > { %3289 = vmatmul.mubr.msk.bf16.vlgmr.msra.gmra.mrb[0].mxu1 %vm612_vm2, %v3872_v9  ;;  %3293 = vmatpush3.bf16.msra.mxu0 %v3874_v16  ;;  %v3711_v9 = vpack.c.bf16 %v976_v6, %v975_v5  ;;  %v3738_v16 = vpack.c.bf16 %v2867_v14, %v2866_v13  ;;  %v2911_v6 = vld [vmem:[%s4938_s14 + $0x90] sm:$0xff]  ;;  %v2916_v13 = vld [vmem:[%s4938_s14 + $0xb8] sm:$0xff] }
  0x2d   : > { %3315 = vmatprep.mubr.msk.f32.mxu1 %vm4015_vm0, %v4014_v1  ;;  %3300 = vmatprep.mubr.msk.bf16.mxu0 %vm4015_vm0, %v4014_v1  ;;  %v3777_v8 = vpack.c.bf16 %v2912_v7, %v2911_v6  ;;  %v3783_v14 = vpack.c.bf16 %v2916_v13, %v2915_v12  ;;  %v2924_v6 = vld [vmem:[%s4938_s14 + $0xf8] sm:$0xff] }
  0x2e   : > { %3294 = vmatprep.subr.bf16.mxu0 %v4014_v1 }
  0x30   : > { %3295 = vmatpush3.bf16.msra.mxu0 %v3875_v21  ;;  %v3717_v21 = vpack.c.bf16 %v980_v18, %v979_v17  ;;  %v2919_v18 = vld [vmem:[%s4938_s14 + $0xd0] sm:$0xff] }
  0x31   : > { %3296 = vmatprep.subr.bf16.mxu0 %v4014_v1 }
  0x34   : > { %3297 = vmatpush3.bf16.msra.mxu0 %v3876_v22  ;;  %v3741_v22 = vpack.c.bf16 %v2869_v20, %v2868_v19  ;;  %v2920_v19 = vld [vmem:[%s4938_s14 + $0xd8] sm:$0xff] }
  0x35   : > { %3298 = vmatprep.subr.bf16.mxu0 %v4014_v1  ;;  %v3789_v20 = vpack.c.bf16 %v2920_v19, %v2919_v18  ;;  %v3895_v18 = vld [vmem:[%s4929_s5 + $0x18] sm:$0xff]   ;;  %v3896_v19 = vld [vmem:[%s4929_s5 + $0x30] sm:$0xff]  }
  0x38   : > { %3299 = vmatpush3.bf16.msra.mxu0 %v3877_v23  ;;  %v981_v23 = vld [vmem:[%s4936_s12 + $0x60] sm:$0xff] }
  0x39   : > { %3695 = vmatprep.subr.bf16.mxu0 %v4016_v25 }
  0x3b   : > { %3301 = vmatmul.mubr.msk.bf16.vlgmr.msra.gmra.mrb[4].mxu0 %vm612_vm2, %v736_v24  ;;  %v982_v24 = vld [vmem:[%s4936_s12 + $0x68] sm:$0xff] }
  0x3c   : > { %3308 = vmatprep.mubr.msk.f32.mxu0 %vm4015_vm0, %v4014_v1 }
  0xfe   : > { %v650_v27 = vpop.f32.mrb[0].mxu0 }
  0xff   : > { %v717_v26 = vpop.f32.mrb[0].mxu1  ;;  %v3278_v30 = vpop.f32.mrb[1].mxu0 }
 0x100   : > { %v3290_v28 = vpop.f32.mrb[1].mxu1  ;;  %v718_v29 = vadd.f32 %v717_v26, %v650_v27  ;;  %v653_v32 = vpop.f32.mrb[2].mxu0  ;;  %v2870_v26 = vld [vmem:[%s4936_s12 + $0xe0] sm:$0xff]  ;;  %v2871_v27 = vld [vmem:[%s4936_s12 + $0xe8] sm:$0xff]  ;;  %v983_v30 = vld [vmem:[%s4936_s12 + $0x70] sm:$0xff] }
 0x101   : > { %v720_v31 = vpop.f32.mrb[2].mxu1  ;;  %v3279_v35 = vpop.f32.mrb[3].mxu0  ;;  %v3720_v28 = vpack.c.bf16 %v982_v24, %v981_v23 }
 0x102   : > { %v3291_v33 = vpop.f32.mrb[3].mxu1  ;;  %v721_v34 = vadd.f32 %v720_v31, %v653_v32  ;;  %v984_v31 = vld [vmem:[%s4936_s12 + $0x78] sm:$0xff]  ;;  %v2872_v32 = vld [vmem:[%s4936_s12 + $0xf0] sm:$0xff] }
 0x103   : > { %v3723_v33 = vpack.c.bf16 %v984_v31, %v983_v30 }
 0x10e   : > { %v798_v36 = vpop.f32.mrb[4].mxu0 }
 0x10f   : > { %v805_v38 = vadd.f32 %v798_v36, %v718_v29  ;;  %v3302_v39 = vpop.f32.mrb[5].mxu0  ;;  %v3744_v29 = vpack.c.bf16 %v2871_v27, %v2870_v26 }
 0x110   : > { %v801_v40 = vpop.f32.mrb[6].mxu0 }
 0x111   : > { %v814_v41 = vadd.f32 %v2854_v37, %v805_v38  ;;  %v806_v42 = vadd.f32 %v801_v40, %v721_v34  ;;  %v3303_v43 = vpop.f32.mrb[7].mxu0  ;;  %v2873_v34 = vld [vmem:[%s4936_s12 + $0xf8] sm:$0xff]  ;;  %v3878_v38 = vld [vmem:[%s4927_s3] sm:$0xff]  }
 0x112   : > { %v3747_v35 = vpack.c.bf16 %v2873_v34, %v2872_v32  ;;  %v3880_v43 = vld [vmem:[%s4927_s3 + $0x20] sm:$0xff]  }
 0x113   : > { %v815_v44 = vadd.f32 %v2854_v37, %v806_v42  ;;  %v816_v45 = vmax.f32 %v814_v41, 0.0  ;;  %v3879_v42 = vld [vmem:[%s4927_s3 + $0x8] sm:$0xff]  }
 0x115   : > { %v817_v46 = vmax.f32 %v815_v44, 0.0  ;;  %v3881_v44 = vld [vmem:[%s4927_s3 + $0x10] sm:$0xff]  }
 0x117   : > { %v3696_v51 = vpack.c.bf16 %v817_v46, %v816_v45  ;;  %v3882_v45 = vld [vmem:[%s4927_s3 + $0x28] sm:$0xff]   ;;  %v3883_v46 = vld [vmem:[%s4927_s3 + $0x18] sm:$0xff]  }
 0x119   : > { %3697 = vmatpush3.bf16.msra.mxu0 %v3696_v51  ;;  %3700 = vmatpush3.bf16.msra.mxu1 %v3696_v51 }
 0x11a   : > { %3701 = vmatprep.subr.bf16.mxu1 %v4016_v25  ;;  %3725 = vmatprep.subr.bf16.mxu0 %v4016_v25 }
 0x11c   : > { %3309 = vmatmul.mubr.msk.f32.vlgmr.msra.gmra.mrb[8].mxu0 %vm819_vm4, %v818_v52  ;;  %3316 = vmatmul.mubr.msk.f32.vlgmr.msra.gmra.mrb[4].mxu1 %vm819_vm4, %v2856_v53 }
 0x11d   : > { %3703 = vmatpush3.bf16.msra.mxu1 %v3702_v54  ;;  %3727 = vmatpush3.bf16.msra.mxu0 %v3726_v55 }
 0x11e   : > { %3704 = vmatprep.subr.bf16.mxu1 %v4016_v25  ;;  %3728 = vmatprep.subr.bf16.mxu0 %v4016_v25 }
 0x11f   : > { %3350 = vmatprep.mubr.msk.f32.mxu1 %vm4015_vm0, %v4014_v1  ;;  %3385 = vmatprep.mubr.msk.f32.mxu0 %vm4015_vm0, %v4014_v1 }
 0x121   : > { %3706 = vmatpush3.bf16.msra.mxu1 %v3705_v60  ;;  %3730 = vmatpush3.bf16.msra.mxu0 %v3729_v61  ;;  %v3886_v60 = vld [vmem:[%s4927_s3 + $0x40] sm:$0xff]  }
 0x122   : > { %3707 = vmatprep.subr.bf16.mxu1 %v4016_v25  ;;  %3731 = vmatprep.subr.bf16.mxu0 %v4016_v25 }
 0x125   : > { %3709 = vmatpush3.bf16.msra.mxu1 %v3708_v3  ;;  %3733 = vmatpush3.bf16.msra.mxu0 %v3732_v4  ;;  %v2909_v3 = vld [vmem:[%s4938_s14 + $0x80] sm:$0xff]  ;;  %v2910_v4 = vld [vmem:[%s4938_s14 + $0x88] sm:$0xff] }
 0x126   : > { %3710 = vmatprep.subr.bf16.mxu1 %v4016_v25  ;;  %3734 = vmatprep.subr.bf16.mxu0 %v4016_v25  ;;  %v3774_v5 = vpack.c.bf16 %v2910_v4, %v2909_v3  ;;  %v1561_v3 = vld [vmem:[%s4938_s14 + $0x78] sm:$0xff]  ;;  %v2923_v4 = vld [vmem:[%s4938_s14 + $0xf0] sm:$0xff] }
 0x127   : > { %v3795_v7 = vpack.c.bf16 %v2924_v6, %v2923_v4 }
 0x129   : > { %3712 = vmatpush3.bf16.msra.mxu1 %v3711_v9  ;;  %3736 = vmatpush3.bf16.msra.mxu0 %v3735_v10  ;;  %v2913_v9 = vld [vmem:[%s4938_s14 + $0xa0] sm:$0xff]  ;;  %v2914_v10 = vld [vmem:[%s4938_s14 + $0xa8] sm:$0xff] }
 0x12a   : > { %3713 = vmatprep.subr.bf16.mxu1 %v4016_v25  ;;  %3737 = vmatprep.subr.bf16.mxu0 %v4016_v25  ;;  %v3780_v11 = vpack.c.bf16 %v2914_v10, %v2913_v9 }
 0x12d   : > { %3715 = vmatpush3.bf16.msra.mxu1 %v3714_v15  ;;  %3739 = vmatpush3.bf16.msra.mxu0 %v3738_v16  ;;  %v2917_v15 = vld [vmem:[%s4938_s14 + $0xc0] sm:$0xff]  ;;  %v2918_v16 = vld [vmem:[%s4938_s14 + $0xc8] sm:$0xff] }
 0x12e   : > { %3716 = vmatprep.subr.bf16.mxu1 %v4016_v25  ;;  %3740 = vmatprep.subr.bf16.mxu0 %v4016_v25  ;;  %v3786_v17 = vpack.c.bf16 %v2918_v16, %v2917_v15  ;;  %v3892_v15 = vld [vmem:[%s4929_s5 + $0x20] sm:$0xff]   ;;  %v3893_v16 = vld [vmem:[%s4929_s5 + $0x10] sm:$0xff]  }
 0x131   : > { %3718 = vmatpush3.bf16.msra.mxu1 %v3717_v21  ;;  %3742 = vmatpush3.bf16.msra.mxu0 %v3741_v22  ;;  %v2921_v21 = vld [vmem:[%s4938_s14 + $0xe0] sm:$0xff]  ;;  %v2922_v22 = vld [vmem:[%s4938_s14 + $0xe8] sm:$0xff] }
 0x132   : > { %3719 = vmatprep.subr.bf16.mxu1 %v4016_v25  ;;  %3743 = vmatprep.subr.bf16.mxu0 %v4016_v25  ;;  %v3792_v23 = vpack.c.bf16 %v2922_v22, %v2921_v21 }
 0x135   : > { %3721 = vmatpush3.bf16.msra.mxu1 %v3720_v28  ;;  %3745 = vmatpush3.bf16.msra.mxu0 %v3744_v29 }
 0x136   : > { %3722 = vmatprep.subr.bf16.mxu1 %v4016_v25  ;;  %3746 = vmatprep.subr.bf16.mxu0 %v4016_v25 }
 0x139   : > { %3724 = vmatpush3.bf16.msra.mxu1 %v3723_v33  ;;  %3748 = vmatpush3.bf16.msra.mxu0 %v3747_v35  ;;  %v2905_v35 = vld [vmem:[%s4928_s4] ss:$0 sm:$0xff] }
 0x13a   : > { %3388 = vmatprep.subr.bf16.mxu1 %v4014_v1  ;;  %3400 = vmatprep.subr.bf16.mxu0 %v4014_v1 }
 0x1ef   : > { %v889_v36 = vpop.f32.mrb[8].mxu0  ;;  %v964_v37 = vpop.f32.mrb[4].mxu1 }
 0x1f0   : > { %v968_v39 = vmax.f32 %v889_v36, %v964_v37  ;;  %v3310_v40 = vpop.f32.mrb[9].mxu0  ;;  %v3317_v41 = vpop.f32.mrb[5].mxu1 }
 0x1f2   : > { %3351 = vmatmul.mubr.f32.vlgmr.msra.gmra.mrb[6].mxu1 %v968_v39  ;;  %3386 = vmatmul.mubr.f32.vlgmr.msra.gmra.mrb[10].mxu0 %v968_v39 }
 0x1f3   : > { %3401 = vmatpush3.bf16.msra.mxu0 %v3878_v38  ;;  %3408 = vmatprep.mubr.msk.bf16.mxu0 %vm4015_vm0, %v4014_v1 }
 0x1f4   : > { %3402 = vmatprep.subr.bf16.mxu0 %v4014_v1  ;;  %3396 = vmatprep.mubr.msk.bf16.mxu1 %vm4015_vm0, %v4014_v1 }
 0x1f5   : > { %3389 = vmatpush3.bf16.msra.mxu1 %v3880_v43  ;;  %v1546_v43 = vld [vmem:[%s4938_s14] sm:$0xff] }
 0x1f6   : > { %3390 = vmatprep.subr.bf16.mxu1 %v4014_v1 }
 0x1f7   : > { %3403 = vmatpush3.bf16.msra.mxu0 %v3879_v42  ;;  %v1395_v42 = vld [vmem:[%s4937_s13] sm:$0xf] }
 0x1f8   : > { %3404 = vmatprep.subr.bf16.mxu0 %v4014_v1 }
 0x1f9   : > { %3391 = vmatpush3.bf16.msra.mxu1 %v3882_v45  ;;  %v2907_v45 = vld [vmem:[%s4937_s13 + $0x4] sm:$0xf] }
 0x1fa   : > { %3392 = vmatprep.subr.bf16.mxu1 %v4014_v1 }
 0x1fb   : > { %3405 = vmatpush3.bf16.msra.mxu0 %v3881_v44  ;;  %v1547_v44 = vld [vmem:[%s4938_s14 + $0x8] sm:$0xff] }
 0x1fc   : > { %3406 = vmatprep.subr.bf16.mxu0 %v4014_v1 }
 0x1fd   : > { %3393 = vmatpush3.bf16.msra.mxu1 %v3884_v47  ;;  %v1548_v47 = vld [vmem:[%s4938_s14 + $0x10] sm:$0xff] }
 0x1fe   : > { %3394 = vmatprep.subr.bf16.mxu1 %v4014_v1 }
 0x1ff   : > { %3407 = vmatpush3.bf16.msra.mxu0 %v3883_v46  ;;  %v3750_v46 = vpack.c.bf16 %v1547_v44, %v1546_v43  ;;  %v3908_v43 = vld [vmem:[%s4931_s7 + $0x50] sm:$0xff]   ;;  %v3907_v44 = vld [vmem:[%s4931_s7 + $0x18] sm:$0xff]  }
 0x200   : > { %3424 = vmatprep.subr.mxu0 %v4014_v1 }
 0x201   : > { %3395 = vmatpush3.bf16.msra.mxu1 %v3885_v48  ;;  %v1549_v48 = vld [vmem:[%s4938_s14 + $0x18] sm:$0xff] }
 0x202   : > { %3412 = vmatprep.subr.bf16.mxu1 %v4014_v1 }
 0x2c5   : > { %v1051_v49 = vpop.f32.mrb[6].mxu1  ;;  %v1138_v50 = vpop.f32.mrb[10].mxu0 }
 0x2c6   : > { %v1142_v51 = vmax.f32 %v1051_v49, %v1138_v50  ;;  %v3352_v52 = vpop.f32.mrb[7].mxu1  ;;  %v3387_v53 = vpop.f32.mrb[11].mxu0  ;;  %v3753_v49 = vpack.c.bf16 %v1549_v48, %v1548_v47  ;;  %v1550_v50 = vld [vmem:[%s4938_s14 + $0x20] sm:$0xff]  ;;  %v3911_v47 = vld [vmem:[%s4931_s7 + $0x28] sm:$0xff]  }
 0x2c7   : > { %v1552_v53 = vld [vmem:[%s4938_s14 + $0x30] sm:$0xff]  ;;  %v3912_v48 = vld [vmem:[%s4931_s7 + $0x60] sm:$0xff]  }
 0x2c8   : > { %1146 = vst.msk [vmem:[#allocation2 + $0x1] sm:$0xff] %vm612_vm2, %v1142_v51  ;;  %v1551_v51 = vld [vmem:[%s4938_s14 + $0x28] sm:$0xff] }
 0x2c9   : > { %v3756_v52 = vpack.c.bf16 %v1551_v51, %v1550_v50  ;;  %v3914_v50 = vld [vmem:[%s4931_s7 + $0x68] sm:$0xff]   ;;  %v3915_v51 = vld [vmem:[%s4931_s7 + $0x38] sm:$0xff]  }
 0x2cf   : > { %v1147_v54 = vld [vmem:[#allocation2] sm:$0xff]  ;;  %v1148_v55 = vld [vmem:[#allocation2 + $0x8] sm:$0x3] }
 0x2d0   : > { %v1149_v56 = vpack.c.bf16 %v1148_v55, %v1147_v54  ;;  %v1553_v54 = vld [vmem:[%s4938_s14 + $0x38] sm:$0xff] }
 0x2d1   : > { %v3759_v55 = vpack.c.bf16 %v1553_v54, %v1552_v53  ;;  %v3917_v53 = vld [vmem:[%s4931_s7 + $0x78] sm:$0xff]  }
 0x2d2   : > { %3409 = vmatmul.mubr.msk.bf16.vlgmr.msra.gmra.mrb[12].mxu0 %vm612_vm2, %v1149_v56  ;;  %v1170_v57 = vshll.u32 %v1149_v56, 16  ;;  %v1168_v58 = vshrl.u32 %v1149_v56, 16  ;;  %v1317_v2 = vrot.slane %v1149_v56, 1  ;;  %v1554_v56 = vld [vmem:[%s4938_s14 + $0x40] sm:$0xff] }
 0x2d3   : > { %3426 = vmatprep.mubr.msk.f32.mxu0 %vm4015_vm0, %v4014_v1 }
 0x2d4   : > { %v1172_v59 = vrot.slane %v1170_v57, 1  ;;  %v1555_v57 = vld [vmem:[%s4938_s14 + $0x48] sm:$0xff] }
 0x2d6   : > { %v1173_v61 = vor.u32 %v1172_v59, %v1168_v58  ;;  %v3762_v58 = vpack.c.bf16 %v1555_v57, %v1554_v56  ;;  %v1556_v59 = vld [vmem:[%s4938_s14 + $0x50] sm:$0xff] }
 0x2d8   : > { %3397 = vmatmul.mubr.msk.bf16.vlgmr.msra.gmra.mrb[8].mxu1 %vm612_vm2, %v1173_v61 }
 0x2d9   : > { %3413 = vmatpush3.bf16.msra.mxu1 %v3886_v60  ;;  %3420 = vmatprep.mubr.msk.bf16.mxu1 %vm4015_vm0, %v4014_v1  ;;  %v1557_v60 = vld [vmem:[%s4938_s14 + $0x58] sm:$0xff] }
 0x2da   : > { %3414 = vmatprep.subr.bf16.mxu1 %v4014_v1  ;;  %v3765_v61 = vpack.c.bf16 %v1557_v60, %v1556_v59 }
 0x2dd   : > { %3415 = vmatpush3.bf16.msra.mxu1 %v3887_v62  ;;  %v1558_v62 = vld [vmem:[%s4938_s14 + $0x60] sm:$0xff] }
 0x2de   : > { %3416 = vmatprep.subr.bf16.mxu1 %v4014_v1 }
 0x2e1   : > { %3417 = vmatpush3.bf16.msra.mxu1 %v3888_v63  ;;  %v1559_v63 = vld [vmem:[%s4938_s14 + $0x68] sm:$0xff] }
 0x2e2   : > { %3418 = vmatprep.subr.bf16.mxu1 %v4014_v1 }
 0x2e5   : > { %3419 = vmatpush3.bf16.msra.mxu1 %v3889_v0  ;;  %v3768_v0 = vpack.c.bf16 %v1559_v63, %v1558_v62 }
 0x2e6   : > { %3773 = vmatprep.subr.bf16.mxu1 %v4016_v25 }
 0x2e8   : > { %3421 = vmatmul.mubr.msk.bf16.vlgmr.msra.gmra.mrb[12].mxu1 %vm612_vm2, %v1317_v2  ;;  %v1560_v2 = vld [vmem:[%s4938_s14 + $0x70] sm:$0xff] }
 0x2e9   : > { %3501 = vmatprep.mubr.msk.f32.mxu1 %vm4015_vm0, %v4014_v1  ;;  %3775 = vmatpush3.bf16.msra.mxu1 %v3774_v5  ;;  %v3771_v5 = vpack.c.bf16 %v1561_v3, %v1560_v2 }
 0x2ea   : > { %3776 = vmatprep.subr.bf16.mxu1 %v4016_v25 }
 0x2ed   : > { %3778 = vmatpush3.bf16.msra.mxu1 %v3777_v8 }
 0x2ee   : > { %3779 = vmatprep.subr.bf16.mxu1 %v4016_v25 }
 0x2f1   : > { %3781 = vmatpush3.bf16.msra.mxu1 %v3780_v11  ;;  %v3890_v11 = vld [vmem:[%s4929_s5] sm:$0xff]  }
 0x2f2   : > { %3782 = vmatprep.subr.bf16.mxu1 %v4016_v25 }
 0x2f5   : > { %3784 = vmatpush3.bf16.msra.mxu1 %v3783_v14  ;;  %v3891_v14 = vld [vmem:[%s4929_s5 + $0x8] sm:$0xff]  }
 0x2f6   : > { %3785 = vmatprep.subr.bf16.mxu1 %v4016_v25 }
 0x2f9   : > { %3787 = vmatpush3.bf16.msra.mxu1 %v3786_v17  ;;  %v3894_v17 = vld [vmem:[%s4929_s5 + $0x28] sm:$0xff]  }
 0x2fa   : > { %3788 = vmatprep.subr.bf16.mxu1 %v4016_v25 }
 0x2fd   : > { %3790 = vmatpush3.bf16.msra.mxu1 %v3789_v20  ;;  %v3897_v20 = vld [vmem:[%s4929_s5 + $0x38] sm:$0xff]  }
 0x2fe   : > { %3791 = vmatprep.subr.bf16.mxu1 %v4016_v25 }
 0x301   : > { %3793 = vmatpush3.bf16.msra.mxu1 %v3792_v23 }
 0x302   : > { %3794 = vmatprep.subr.bf16.mxu1 %v4016_v25 }
 0x305   : > { %3796 = vmatpush3.bf16.msra.mxu1 %v3795_v7 }
 0x306   : > { %3516 = vmatprep.subr.bf16.mxu1 %v4014_v1 }
 0x3a5   : > { %v1301_v24 = vpop.f32.mrb[12].mxu0 }
 0x3a6   : > { %v3410_v26 = vpop.f32.mrb[13].mxu0 }
 0x3a7   : > { %v1304_v27 = vpop.f32.mrb[14].mxu0 }
 0x3a8   : > { %v3411_v28 = vpop.f32.mrb[15].mxu0 }
 0x3ab   : > { %v1235_v29 = vpop.f32.mrb[8].mxu1 }
 0x3ac   : > { %v1302_v30 = vadd.f32 %v1301_v24, %v1235_v29  ;;  %v3398_v31 = vpop.f32.mrb[9].mxu1 }
 0x3ad   : > { %v1238_v32 = vpop.f32.mrb[10].mxu1 }
 0x3ae   : > { %v3399_v33 = vpop.f32.mrb[11].mxu1  ;;  %v3898_v32 = vld [vmem:[%s4929_s5 + $0x40] sm:$0xff]  }
 0x3bb   : > { %v1379_v34 = vpop.f32.mrb[12].mxu1 }
 0x3bc   : > { %v1385_v36 = vadd.f32 %v1379_v34, %v1302_v30  ;;  %v3422_v37 = vpop.f32.mrb[13].mxu1  ;;  %v3899_v34 = vld [vmem:[%s4929_s5 + $0x48] sm:$0xff]  }
 0x3bd   : > { %v1382_v38 = vpop.f32.mrb[14].mxu1 }
 0x3be   : > { %v1393_v39 = vadd.f32 %v2905_v35, %v1385_v36  ;;  %v3423_v40 = vpop.f32.mrb[15].mxu1  ;;  %v3900_v35 = vld [vmem:[%s4929_s5 + $0x50] sm:$0xff]   ;;  %v3901_v36 = vld [vmem:[%s4929_s5 + $0x58] sm:$0xff]   ;;  %v3902_v38 = vld [vmem:[%s4931_s7] sm:$0xff]  }
 0x3bf   : > { %v3904_v40 = vld [vmem:[%s4931_s7 + $0x40] sm:$0xff]  }
 0x3c0   : > { %v1394_v41 = vmax.f32 %v1393_v39, 0.0  ;;  %v3903_v39 = vld [vmem:[%s4931_s7 + $0x8] sm:$0xff]  }
 0x3c2   : > { %3425 = vmatpush3.msra.mxu0 %v1394_v41 }
 0x3c3   : > { %3427 = vmatmul.mubr.msk.f32.vlgmr.msra.gmra.mrb[16].mxu0 %vm1396_vm6, %v1395_v42  ;;  %3429 = vmatprep.subr.mxu0 %v4014_v1  ;;  %v3905_v42 = vld [vmem:[%s4931_s7 + $0x10] sm:$0xff]  }
 0x3c4   : > { %3430 = vmatpush3.msra.mxu0 %v1394_v41  ;;  %3431 = vmatprep.mubr.msk.f32.mxu0 %vm4015_vm0, %v4014_v1  ;;  %v3906_v41 = vld [vmem:[%s4931_s7 + $0x48] sm:$0xff]  }
 0x3c5   : > { %3749 = vmatprep.subr.bf16.mxu0 %v4016_v25 }
 0x3c7   : > { %3432 = vmatmul.mubr.msk.f32.vlgmr.msra.gmra.mrb[18].mxu0 %vm1396_vm6, %v2907_v45  ;;  %v3909_v45 = vld [vmem:[%s4931_s7 + $0x20] sm:$0xff]  }
 0x3c8   : > { %3751 = vmatpush3.bf16.msra.mxu0 %v3750_v46  ;;  %3466 = vmatprep.mubr.msk.f32.mxu0 %vm4015_vm0, %v4014_v1  ;;  %v3910_v46 = vld [vmem:[%s4931_s7 + $0x58] sm:$0xff]  }
 0x3c9   : > { %3752 = vmatprep.subr.bf16.mxu0 %v4016_v25 }
 0x3cc   : > { %3754 = vmatpush3.bf16.msra.mxu0 %v3753_v49  ;;  %v3913_v49 = vld [vmem:[%s4931_s7 + $0x30] sm:$0xff]  }
 0x3cd   : > { %3755 = vmatprep.subr.bf16.mxu0 %v4016_v25 }
 0x3d0   : > { %3757 = vmatpush3.bf16.msra.mxu0 %v3756_v52  ;;  %v3916_v52 = vld [vmem:[%s4931_s7 + $0x70] sm:$0xff]  }
 0x3d1   : > { %3758 = vmatprep.subr.bf16.mxu0 %v4016_v25 }
 0x3d4   : > { %3760 = vmatpush3.bf16.msra.mxu0 %v3759_v55 }
 0x3d5   : > { %3761 = vmatprep.subr.bf16.mxu0 %v4016_v25 }
 0x3d8   : > { %3763 = vmatpush3.bf16.msra.mxu0 %v3762_v58 }
 0x3d9   : > { %3764 = vmatprep.subr.bf16.mxu0 %v4016_v25 }
 0x3dc   : > { %3766 = vmatpush3.bf16.msra.mxu0 %v3765_v61 }
 0x3dd   : > { %3767 = vmatprep.subr.bf16.mxu0 %v4016_v25 }
 0x3e0   : > { %3769 = vmatpush3.bf16.msra.mxu0 %v3768_v0  ;;  %v2956_v0 = vld [vmem:[%s4930_s6] ss:$0 sm:$0xff] }
 0x3e1   : > { %3770 = vmatprep.subr.bf16.mxu0 %v4016_v25 }
 0x3e4   : > { %3772 = vmatpush3.bf16.msra.mxu0 %v3771_v5 }
 0x3e5   : > { %3504 = vmatprep.subr.bf16.mxu0 %v4014_v1 }
 0x496   : > { %v1466_v8 = vpop.f32.mrb[16].mxu0 }
 0x497   : > { %v3428_v9 = vpop.f32.mrb[17].mxu0 }
 0x49a   : > { %v1541_v10 = vpop.f32.mrb[18].mxu0 }
 0x49b   : > { %v1545_v12 = vmax.f32 %v1466_v8, %v1541_v10  ;;  %v3433_v13 = vpop.f32.mrb[19].mxu0 }
 0x49c   : > { %v3918_v13 = vld [vmem:[%s4931_s7 + $0x80] sm:$0xff]  }
 0x49d   : > { %3467 = vmatmul.mubr.f32.vlgmr.msra.gmra.mrb[20].mxu0 %v1545_v12  ;;  %3502 = vmatmul.mubr.f32.vlgmr.msra.gmra.mrb[16].mxu1 %v1545_v12 }
 0x49e   : > { %3517 = vmatpush3.bf16.msra.mxu1 %v3890_v11  ;;  %3524 = vmatprep.mubr.msk.bf16.mxu1 %vm4015_vm0, %v4014_v1 }
 0x49f   : > { %3518 = vmatprep.subr.bf16.mxu1 %v4014_v1  ;;  %3512 = vmatprep.mubr.msk.bf16.mxu0 %vm4015_vm0, %v4014_v1 }
 0x4a0   : > { %3505 = vmatpush3.bf16.msra.mxu0 %v3892_v15  ;;  %v3919_v15 = vld [vmem:[%s4931_s7 + $0x88] sm:$0xff]  }
 0x4a1   : > { %3506 = vmatprep.subr.bf16.mxu0 %v4014_v1 }
 0x4a2   : > { %3519 = vmatpush3.bf16.msra.mxu1 %v3891_v14 }
 0x4a3   : > { %3520 = vmatprep.subr.bf16.mxu1 %v4014_v1 }
 0x4a4   : > { %3507 = vmatpush3.bf16.msra.mxu0 %v3894_v17  ;;  %v3921_v17 = vld [vmem:[%s4931_s7 + $0x98] sm:$0xff]  }
 0x4a5   : > { %3508 = vmatprep.subr.bf16.mxu0 %v4014_v1 }
 0x4a6   : > { %3521 = vmatpush3.bf16.msra.mxu1 %v3893_v16  ;;  %v3920_v16 = vld [vmem:[%s4931_s7 + $0x90] sm:$0xff]  }
 0x4a7   : > { %3522 = vmatprep.subr.bf16.mxu1 %v4014_v1 }
 0x4a8   : > { %3509 = vmatpush3.bf16.msra.mxu0 %v3896_v19  ;;  %v3923_v19 = vld [vmem:[%s4931_s7 + $0xa8] sm:$0xff]  }
 0x4a9   : > { %3510 = vmatprep.subr.bf16.mxu0 %v4014_v1 }
 0x4aa   : > { %3523 = vmatpush3.bf16.msra.mxu1 %v3895_v18  ;;  %v3922_v18 = vld [vmem:[%s4931_s7 + $0xa0] sm:$0xff]  }
 0x4ab   : > { %3540 = vmatprep.subr.bf16.mxu1 %v4014_v1 }
 0x4ac   : > { %3511 = vmatpush3.bf16.msra.mxu0 %v3897_v20  ;;  %v3924_v20 = vld [vmem:[%s4931_s7 + $0xb0] sm:$0xff]  }
 0x4ad   : > { %3528 = vmatprep.subr.bf16.mxu0 %v4014_v1 }
 0x570   : > { %v1628_v21 = vpop.f32.mrb[20].mxu0  ;;  %v1715_v22 = vpop.f32.mrb[16].mxu1 }
 0x571   : > { %v1719_v23 = vmax.f32 %v1628_v21, %v1715_v22  ;;  %v3468_v24 = vpop.f32.mrb[21].mxu0  ;;  %v3503_v26 = vpop.f32.mrb[17].mxu1  ;;  %v3925_v21 = vld [vmem:[%s4931_s7 + $0xb8] sm:$0xff]  }
 0x572   : > { %v3928_v24 = vld [vmem:[%s4933_s9 + $0x40] sm:$0xff]   ;;  %v3927_v26 = vld [vmem:[%s4933_s9 + $0x8] sm:$0xff]  }
 0x573   : > { %1723 = vst.msk [vmem:[#allocation3 + $0x1] sm:$0xf] %vm1722_vm7, %v1719_v23  ;;  %v3926_v23 = vld [vmem:[%s4933_s9] sm:$0xff]  }
 0x57a   : > { %v1724_v27 = vld [vmem:[#allocation3] sm:$0x3f] }
 0x57b   : > { %v1725_v28 = vpack.c.bf16 %v1724_v27, %v1724_v27  ;;  %v3930_v27 = vld [vmem:[%s4933_s9 + $0x48] sm:$0xff]  }
 0x57d   : > { %3525 = vmatmul.mubr.msk.bf16.vlgmr.msra.gmra.mrb[20].mxu1 %vm612_vm2, %v1725_v28  ;;  %v1746_v29 = vshll.u32 %v1725_v28, 16  ;;  %v1744_v30 = vshrl.u32 %v1725_v28, 16  ;;  %v1893_v37 = vrot.slane %v1725_v28, 1  ;;  %v3929_v28 = vld [vmem:[%s4933_s9 + $0x10] sm:$0xff]  }
 0x57e   : > { %3556 = vmatprep.mubr.msk.bf16.mxu1 %vm4015_vm0, %v4014_v1  ;;  %3541 = vmatpush3.bf16.msra.mxu1 %v3904_v40 }
 0x57f   : > { %v1748_v31 = vrot.slane %v1746_v29, 1  ;;  %3542 = vmatprep.subr.bf16.mxu1 %v4014_v1  ;;  %v3932_v29 = vld [vmem:[%s4933_s9 + $0x50] sm:$0xff]  }
 0x581   : > { %v1749_v33 = vor.u32 %v1748_v31, %v1744_v30  ;;  %v3931_v30 = vld [vmem:[%s4933_s9 + $0x18] sm:$0xff]   ;;  %v3933_v31 = vld [vmem:[%s4933_s9 + $0x20] sm:$0xff]  }
 0x582   : > { %3543 = vmatpush3.bf16.msra.mxu1 %v3906_v41 }
 0x583   : > { %3513 = vmatmul.mubr.msk.bf16.vlgmr.msra.gmra.mrb[24].mxu0 %vm612_vm2, %v1749_v33  ;;  %3544 = vmatprep.subr.bf16.mxu1 %v4014_v1  ;;  %v3935_v33 = vld [vmem:[%s4933_s9 + $0x28] sm:$0xff]  }
 0x584   : > { %3529 = vmatpush3.bf16.msra.mxu0 %v3898_v32  ;;  %3536 = vmatprep.mubr.msk.bf16.mxu0 %vm4015_vm0, %v4014_v1  ;;  %v3934_v32 = vld [vmem:[%s4933_s9 + $0x58] sm:$0xff]  }
 0x585   : > { %3530 = vmatprep.subr.bf16.mxu0 %v4014_v1 }
 0x586   : > { %3545 = vmatpush3.bf16.msra.mxu1 %v3908_v43 }
 0x587   : > { %3546 = vmatprep.subr.bf16.mxu1 %v4014_v1 }
 0x588   : > { %3531 = vmatpush3.bf16.msra.mxu0 %v3899_v34  ;;  %v3936_v34 = vld [vmem:[%s4933_s9 + $0x60] sm:$0xff]  }
 0x589   : > { %3532 = vmatprep.subr.bf16.mxu0 %v4014_v1 }
 0x58a   : > { %3547 = vmatpush3.bf16.msra.mxu1 %v3910_v46 }
 0x58b   : > { %3548 = vmatprep.subr.bf16.mxu1 %v4014_v1 }
 0x58c   : > { %3533 = vmatpush3.bf16.msra.mxu0 %v3900_v35  ;;  %v3937_v35 = vld [vmem:[%s4933_s9 + $0x30] sm:$0xff]  }
 0x58d   : > { %3534 = vmatprep.subr.bf16.mxu0 %v4014_v1 }
 0x58e   : > { %3549 = vmatpush3.bf16.msra.mxu1 %v3912_v48 }
 0x58f   : > { %3550 = vmatprep.subr.bf16.mxu1 %v4014_v1 }
 0x590   : > { %3535 = vmatpush3.bf16.msra.mxu0 %v3901_v36  ;;  %v3938_v36 = vld [vmem:[%s4933_s9 + $0x68] sm:$0xff]  }
 0x591   : > { %3560 = vmatprep.subr.bf16.mxu0 %v4014_v1 }
 0x592   : > { %3551 = vmatpush3.bf16.msra.mxu1 %v3914_v50  ;;  %v3013_v50 = vld [vmem:[%s4932_s8] ss:$0 sm:$0xff] }
 0x593   : > { %3537 = vmatmul.mubr.msk.bf16.vlgmr.msra.gmra.mrb[28].mxu0 %vm612_vm2, %v1893_v37  ;;  %3552 = vmatprep.subr.bf16.mxu1 %v4014_v1  ;;  %v3939_v37 = vld [vmem:[%s4933_s9 + $0x38] sm:$0xff]  }
 0x594   : > { %3576 = vmatprep.mubr.msk.bf16.mxu0 %vm4015_vm0, %v4014_v1  ;;  %3561 = vmatpush3.bf16.msra.mxu0 %v3902_v38  ;;  %v3940_v38 = vld [vmem:[%s4933_s9 + $0x70] sm:$0xff]  }
 0x595   : > { %3562 = vmatprep.subr.bf16.mxu0 %v4014_v1 }
 0x596   : > { %3553 = vmatpush3.bf16.msra.mxu1 %v3916_v52 }
 0x597   : > { %3554 = vmatprep.subr.bf16.mxu1 %v4014_v1 }
 0x598   : > { %3563 = vmatpush3.bf16.msra.mxu0 %v3903_v39  ;;  %v3941_v39 = vld [vmem:[%s4933_s9 + $0x78] sm:$0xff]  }
 0x599   : > { %3564 = vmatprep.subr.bf16.mxu0 %v4014_v1 }
 0x59a   : > { %3555 = vmatpush3.bf16.msra.mxu1 %v3917_v53 }
 0x59b   : > { %3580 = vmatprep.subr.bf16.mxu1 %v4014_v1 }
 0x59c   : > { %3565 = vmatpush3.bf16.msra.mxu0 %v3905_v42 }
 0x59d   : > { %3566 = vmatprep.subr.bf16.mxu0 %v4014_v1 }
 0x5a0   : > { %3567 = vmatpush3.bf16.msra.mxu0 %v3907_v44 }
 0x5a1   : > { %3568 = vmatprep.subr.bf16.mxu0 %v4014_v1 }
 0x5a4   : > { %3569 = vmatpush3.bf16.msra.mxu0 %v3909_v45 }
 0x5a5   : > { %3570 = vmatprep.subr.bf16.mxu0 %v4014_v1 }
 0x5a8   : > { %3571 = vmatpush3.bf16.msra.mxu0 %v3911_v47 }
 0x5a9   : > { %3572 = vmatprep.subr.bf16.mxu0 %v4014_v1 }
 0x5ac   : > { %3573 = vmatpush3.bf16.msra.mxu0 %v3913_v49 }
 0x5ad   : > { %3574 = vmatprep.subr.bf16.mxu0 %v4014_v1 }
 0x5b0   : > { %3575 = vmatpush3.bf16.msra.mxu0 %v3915_v51 }
 0x5b1   : > { %3600 = vmatprep.subr.bf16.mxu0 %v4014_v1 }
 0x650   : > { %v1877_v54 = vpop.f32.mrb[20].mxu1 }
 0x651   : > { %v3526_v55 = vpop.f32.mrb[21].mxu1 }
 0x652   : > { %v1880_v56 = vpop.f32.mrb[22].mxu1 }
 0x653   : > { %v3527_v57 = vpop.f32.mrb[23].mxu1 }
 0x656   : > { %v1811_v58 = vpop.f32.mrb[24].mxu0 }
 0x657   : > { %v1878_v59 = vadd.f32 %v1877_v54, %v1811_v58  ;;  %v3514_v60 = vpop.f32.mrb[25].mxu0 }
 0x658   : > { %v1814_v61 = vpop.f32.mrb[26].mxu0 }
 0x659   : > { %v3515_v62 = vpop.f32.mrb[27].mxu0 }
 0x65a   : > { %v3942_v62 = vld [vmem:[%s4933_s9 + $0x80] sm:$0xff]  }
 0x666   : > { %v1955_v63 = vpop.f32.mrb[28].mxu0 }
 0x667   : > { %v1961_v2 = vadd.f32 %v1955_v63, %v1878_v59  ;;  %v3538_v3 = vpop.f32.mrb[29].mxu0 }
 0x668   : > { %v1958_v4 = vpop.f32.mrb[30].mxu0  ;;  %v3945_v3 = vld [vmem:[%s4933_s9 + $0x98] sm:$0xff]  }
 0x669   : > { %v1969_v5 = vadd.f32 %v2956_v0, %v1961_v2  ;;  %v3539_v6 = vpop.f32.mrb[31].mxu0  ;;  %v3943_v0 = vld [vmem:[%s4933_s9 + $0x88] sm:$0xff]   ;;  %v3944_v2 = vld [vmem:[%s4933_s9 + $0x90] sm:$0xff]   ;;  %v3946_v4 = vld [vmem:[%s4933_s9 + $0xa0] sm:$0xff]  }
 0x66a   : > { %v3948_v6 = vld [vmem:[%s4933_s9 + $0xb0] sm:$0xff]  }
 0x66b   : > { %v1970_v7 = vmax.f32 %v1969_v5, 0.0  ;;  %v3947_v5 = vld [vmem:[%s4933_s9 + $0xa8] sm:$0xff]  }
 0x66d   : > { %1973 = vst [vmem:[#allocation4 + $0x1] sm:$0xf] %v1970_v7  ;;  %v3949_v7 = vld [vmem:[%s4933_s9 + $0xb8] sm:$0xff]  }
 0x674   : > { %v1974_v8 = vld [vmem:[#allocation4] sm:$0x3f] }
 0x675   : > { %v1975_v9 = vpack.c.bf16 %v1974_v8, %v1974_v8 }
 0x677   : > { %3577 = vmatmul.mubr.bf16.vlgmr.msra.gmra.mrb[32].mxu0 %v1975_v9  ;;  %v2012_v10 = vshll.u32 %v1975_v9, 16  ;;  %v2010_v11 = vshrl.u32 %v1975_v9, 16  ;;  %v2211_v22 = vrot.slane %v1975_v9, 1  ;;  %v2659_v9 = vld [vmem:[%s4939_s15] sm:$0xff] }
 0x678   : > { %3616 = vmatprep.mubr.msk.bf16.mxu0 %vm4015_vm0, %v4014_v1  ;;  %3601 = vmatpush3.bf16.msra.mxu0 %v3928_v24  ;;  %v2670_v24 = vld [vmem:[%s4939_s15 + $0x58] sm:$0xff] }
 0x679   : > { %v2014_v12 = vrot.slane %v2012_v10, 1  ;;  %3602 = vmatprep.subr.bf16.mxu0 %v4014_v1  ;;  %v2660_v10 = vld [vmem:[%s4939_s15 + $0x8] sm:$0xff] }
 0x67b   : > { %v2015_v14 = vor.u32 %v2014_v12, %v2010_v11  ;;  %v2661_v11 = vld [vmem:[%s4939_s15 + $0x10] sm:$0xff]  ;;  %v3798_v12 = vpack.c.bf16 %v2660_v10, %v2659_v9 }
 0x67c   : > { %3603 = vmatpush3.bf16.msra.mxu0 %v3930_v27  ;;  %v2671_v27 = vld [vmem:[%s4939_s15 + $0x60] sm:$0xff] }
 0x67d   : > { %3557 = vmatmul.mubr.bf16.vlgmr.msra.gmra.mrb[24].mxu1 %v2015_v14  ;;  %3604 = vmatprep.subr.bf16.mxu0 %v4014_v1  ;;  %v2663_v14 = vld [vmem:[%s4939_s15 + $0x20] sm:$0xff] }
 0x67e   : > { %3581 = vmatpush3.bf16.msra.mxu1 %v3918_v13  ;;  %3596 = vmatprep.mubr.msk.bf16.mxu1 %vm4015_vm0, %v4014_v1 }
 0x67f   : > { %3582 = vmatprep.subr.bf16.mxu1 %v4014_v1 }
 0x680   : > { %3605 = vmatpush3.bf16.msra.mxu0 %v3932_v29 }
 0x681   : > { %3606 = vmatprep.subr.bf16.mxu0 %v4014_v1 }
 0x682   : > { %3583 = vmatpush3.bf16.msra.mxu1 %v3919_v15  ;;  %v2664_v15 = vld [vmem:[%s4939_s15 + $0x28] sm:$0xff] }
 0x683   : > { %3584 = vmatprep.subr.bf16.mxu1 %v4014_v1 }
 0x684   : > { %3607 = vmatpush3.bf16.msra.mxu0 %v3934_v32 }
 0x685   : > { %3608 = vmatprep.subr.bf16.mxu0 %v4014_v1 }
 0x686   : > { %3585 = vmatpush3.bf16.msra.mxu1 %v3920_v16  ;;  %v3804_v16 = vpack.c.bf16 %v2664_v15, %v2663_v14 }
 0x687   : > { %3586 = vmatprep.subr.bf16.mxu1 %v4014_v1 }
 0x688   : > { %3609 = vmatpush3.bf16.msra.mxu0 %v3936_v34 }
 0x689   : > { %3610 = vmatprep.subr.bf16.mxu0 %v4014_v1 }
 0x68a   : > { %3587 = vmatpush3.bf16.msra.mxu1 %v3921_v17  ;;  %v2665_v17 = vld [vmem:[%s4939_s15 + $0x30] sm:$0xff] }
 0x68b   : > { %3588 = vmatprep.subr.bf16.mxu1 %v4014_v1 }
 0x68c   : > { %3611 = vmatpush3.bf16.msra.mxu0 %v3938_v36 }
 0x68d   : > { %3612 = vmatprep.subr.bf16.mxu0 %v4014_v1 }
 0x68e   : > { %3589 = vmatpush3.bf16.msra.mxu1 %v3922_v18  ;;  %v2666_v18 = vld [vmem:[%s4939_s15 + $0x38] sm:$0xff] }
 0x68f   : > { %3590 = vmatprep.subr.bf16.mxu1 %v4014_v1 }
 0x690   : > { %3613 = vmatpush3.bf16.msra.mxu0 %v3940_v38 }
 0x691   : > { %3614 = vmatprep.subr.bf16.mxu0 %v4014_v1 }
 0x692   : > { %3591 = vmatpush3.bf16.msra.mxu1 %v3923_v19  ;;  %v3807_v19 = vpack.c.bf16 %v2666_v18, %v2665_v17 }
 0x693   : > { %3592 = vmatprep.subr.bf16.mxu1 %v4014_v1 }
 0x694   : > { %3615 = vmatpush3.bf16.msra.mxu0 %v3941_v39 }
 0x695   : > { %3640 = vmatprep.subr.bf16.mxu0 %v4014_v1 }
 0x696   : > { %3593 = vmatpush3.bf16.msra.mxu1 %v3924_v20  ;;  %v2667_v20 = vld [vmem:[%s4939_s15 + $0x40] sm:$0xff] }
 0x697   : > { %3594 = vmatprep.subr.bf16.mxu1 %v4014_v1 }
 0x69a   : > { %3595 = vmatpush3.bf16.msra.mxu1 %v3925_v21  ;;  %v2668_v21 = vld [vmem:[%s4939_s15 + $0x48] sm:$0xff] }
 0x69b   : > { %3620 = vmatprep.subr.bf16.mxu1 %v4014_v1 }
 0x69d   : > { %3597 = vmatmul.mubr.bf16.vlgmr.msra.gmra.mrb[28].mxu1 %v2211_v22  ;;  %v3810_v22 = vpack.c.bf16 %v2668_v21, %v2667_v20 }
 0x69e   : > { %3636 = vmatprep.mubr.msk.bf16.mxu1 %vm4015_vm0, %v4014_v1  ;;  %3621 = vmatpush3.bf16.msra.mxu1 %v3926_v23  ;;  %v2669_v23 = vld [vmem:[%s4939_s15 + $0x50] sm:$0xff] }
 0x69f   : > { %3622 = vmatprep.subr.bf16.mxu1 %v4014_v1 }
 0x6a2   : > { %3623 = vmatpush3.bf16.msra.mxu1 %v3927_v26  ;;  %v3813_v26 = vpack.c.bf16 %v2670_v24, %v2669_v23 }
 0x6a3   : > { %3624 = vmatprep.subr.bf16.mxu1 %v4014_v1 }
 0x6a6   : > { %3625 = vmatpush3.bf16.msra.mxu1 %v3929_v28  ;;  %v2672_v28 = vld [vmem:[%s4939_s15 + $0x68] sm:$0xff] }
 0x6a7   : > { %3626 = vmatprep.subr.bf16.mxu1 %v4014_v1  ;;  %v3816_v29 = vpack.c.bf16 %v2672_v28, %v2671_v27 }
 0x6aa   : > { %3627 = vmatpush3.bf16.msra.mxu1 %v3931_v30  ;;  %v2673_v30 = vld [vmem:[%s4939_s15 + $0x70] sm:$0xff] }
 0x6ab   : > { %3628 = vmatprep.subr.bf16.mxu1 %v4014_v1 }
 0x6ae   : > { %3629 = vmatpush3.bf16.msra.mxu1 %v3933_v31  ;;  %v2674_v31 = vld [vmem:[%s4939_s15 + $0x78] sm:$0xff] }
 0x6af   : > { %3630 = vmatprep.subr.bf16.mxu1 %v4014_v1  ;;  %v3819_v32 = vpack.c.bf16 %v2674_v31, %v2673_v30 }
 0x6b2   : > { %3631 = vmatpush3.bf16.msra.mxu1 %v3935_v33 }
 0x6b3   : > { %3632 = vmatprep.subr.bf16.mxu1 %v4014_v1 }
 0x6b6   : > { %3633 = vmatpush3.bf16.msra.mxu1 %v3937_v35 }
 0x6b7   : > { %3634 = vmatprep.subr.bf16.mxu1 %v4014_v1 }
 0x6ba   : > { %3635 = vmatpush3.bf16.msra.mxu1 %v3939_v37 }
 0x6bb   : > { %3797 = vmatprep.subr.bf16.mxu1 %v4016_v25 }
 0x74a   : > { %v2187_v40 = vpop.f32.mrb[32].mxu0 }
 0x74b   : > { %v3578_v41 = vpop.f32.mrb[33].mxu0 }
 0x74c   : > { %v2190_v42 = vpop.f32.mrb[34].mxu0 }
 0x74d   : > { %v3579_v43 = vpop.f32.mrb[35].mxu0  ;;  %v3070_v42 = vld [vmem:[%s4934_s10] ss:$0 sm:$0xff] }
 0x750   : > { %v2099_v44 = vpop.f32.mrb[24].mxu1 }
 0x751   : > { %v2188_v45 = vadd.f32 %v2187_v40, %v2099_v44  ;;  %v3558_v46 = vpop.f32.mrb[25].mxu1 }
 0x752   : > { %v2102_v47 = vpop.f32.mrb[26].mxu1 }
 0x753   : > { %v3559_v48 = vpop.f32.mrb[27].mxu1 }
 0x770   : > { %v2295_v49 = vpop.f32.mrb[28].mxu1 }
 0x771   : > { %v2301_v51 = vadd.f32 %v2295_v49, %v2188_v45  ;;  %v3598_v52 = vpop.f32.mrb[29].mxu1 }
 0x772   : > { %v2298_v53 = vpop.f32.mrb[30].mxu1 }
 0x773   : > { %v2309_v54 = vadd.f32 %v3013_v50, %v2301_v51  ;;  %v3599_v55 = vpop.f32.mrb[31].mxu1 }
 0x775   : > { %v2310_v56 = vmax.f32 %v2309_v54, 0.0 }
 0x777   : > { %2313 = vst [vmem:[#allocation5 + $0x1] sm:$0xf] %v2310_v56  ;;  %v2675_v56 = vld [vmem:[%s4940_s16] sm:$0x1] }
 0x77e   : > { %v2314_v57 = vld [vmem:[#allocation5] sm:$0x3f] }
 0x77f   : > { %v2315_v58 = vpack.c.bf16 %v2314_v57, %v2314_v57 }
 0x781   : > { %3637 = vmatmul.mubr.bf16.vlgmr.msra.gmra.mrb[32].mxu1 %v2315_v58  ;;  %v2352_v59 = vshll.u32 %v2315_v58, 16  ;;  %v2350_v60 = vshrl.u32 %v2315_v58, 16  ;;  %v2551_v8 = vrot.slane %v2315_v58, 1 }
 0x782   : > { %3692 = vmatprep.mubr.msk.f32.mxu1 %vm4015_vm0, %v4014_v1  ;;  %3799 = vmatpush3.bf16.msra.mxu1 %v3798_v12 }
 0x783   : > { %v2354_v61 = vrot.slane %v2352_v59, 1  ;;  %3800 = vmatprep.subr.bf16.mxu1 %v4016_v25 }
 0x785   : > { %v2355_v63 = vor.u32 %v2354_v61, %v2350_v60 }
 0x787   : > { %3617 = vmatmul.mubr.bf16.vlgmr.msra.gmra.mrb[36].mxu0 %v2355_v63 }
 0x788   : > { %3641 = vmatpush3.bf16.msra.mxu0 %v3942_v62  ;;  %3656 = vmatprep.mubr.msk.bf16.mxu0 %vm4015_vm0, %v4014_v1 }
 0x789   : > { %3642 = vmatprep.subr.bf16.mxu0 %v4014_v1 }
 0x78c   : > { %3643 = vmatpush3.bf16.msra.mxu0 %v3943_v0 }
 0x78d   : > { %3644 = vmatprep.subr.bf16.mxu0 %v4014_v1 }
 0x790   : > { %3645 = vmatpush3.bf16.msra.mxu0 %v3944_v2 }
 0x791   : > { %3646 = vmatprep.subr.bf16.mxu0 %v4014_v1 }
 0x794   : > { %3647 = vmatpush3.bf16.msra.mxu0 %v3945_v3 }
 0x795   : > { %3648 = vmatprep.subr.bf16.mxu0 %v4014_v1 }
 0x798   : > { %3649 = vmatpush3.bf16.msra.mxu0 %v3946_v4 }
 0x799   : > { %3650 = vmatprep.subr.bf16.mxu0 %v4014_v1 }
 0x79c   : > { %3651 = vmatpush3.bf16.msra.mxu0 %v3947_v5 }
 0x79d   : > { %3652 = vmatprep.subr.bf16.mxu0 %v4014_v1 }
 0x7a0   : > { %3653 = vmatpush3.bf16.msra.mxu0 %v3948_v6 }
 0x7a1   : > { %3654 = vmatprep.subr.bf16.mxu0 %v4014_v1  ;;  %v2662_v1 = vld [vmem:[%s4939_s15 + $0x18] sm:$0xff] }
 0x7a2   : > { %v3801_v13 = vpack.c.bf16 %v2662_v1, %v2661_v11 }
 0x7a4   : > { %3655 = vmatpush3.bf16.msra.mxu0 %v3949_v7  ;;  %3802 = vmatpush3.bf16.msra.mxu1 %v3801_v13 }
 0x7a5   : > { %3803 = vmatprep.subr.bf16.mxu1 %v4016_v25 }
 0x7a7   : > { %3657 = vmatmul.mubr.bf16.vlgmr.msra.gmra.mrb[40].mxu0 %v2551_v8 }
 0x7a8   : > { %3805 = vmatpush3.bf16.msra.mxu1 %v3804_v16 }
 0x7a9   : > { %3806 = vmatprep.subr.bf16.mxu1 %v4016_v25 }
 0x7ac   : > { %3808 = vmatpush3.bf16.msra.mxu1 %v3807_v19 }
 0x7ad   : > { %3809 = vmatprep.subr.bf16.mxu1 %v4016_v25 }
 0x7b0   : > { %3811 = vmatpush3.bf16.msra.mxu1 %v3810_v22 }
 0x7b1   : > { %3812 = vmatprep.subr.bf16.mxu1 %v4016_v25 }
 0x7b4   : > { %3814 = vmatpush3.bf16.msra.mxu1 %v3813_v26 }
 0x7b5   : > { %3815 = vmatprep.subr.bf16.mxu1 %v4016_v25 }
 0x7b8   : > { %3817 = vmatpush3.bf16.msra.mxu1 %v3816_v29 }
 0x7b9   : > { %3818 = vmatprep.subr.bf16.mxu1 %v4016_v25 }
 0x7bc   : > { %3820 = vmatpush3.bf16.msra.mxu1 %v3819_v32 }
 0x854   : > { %v2527_v33 = vpop.f32.mrb[32].mxu1 }
 0x855   : > { %v3638_v34 = vpop.f32.mrb[33].mxu1 }
 0x856   : > { %v2530_v35 = vpop.f32.mrb[34].mxu1 }
 0x857   : > { %v3639_v36 = vpop.f32.mrb[35].mxu1 }
 0x85a   : > { %v2439_v37 = vpop.f32.mrb[36].mxu0 }
 0x85b   : > { %v2528_v38 = vadd.f32 %v2527_v33, %v2439_v37  ;;  %v3618_v39 = vpop.f32.mrb[37].mxu0 }
 0x85c   : > { %v2442_v40 = vpop.f32.mrb[38].mxu0 }
 0x85d   : > { %v3619_v41 = vpop.f32.mrb[39].mxu0 }
 0x87a   : > { %v2635_v25 = vpop.f32.mrb[40].mxu0 }
 0x87b   : > { %v2641_v43 = vadd.f32 %v2635_v25, %v2528_v38  ;;  %v3658_v44 = vpop.f32.mrb[41].mxu0 }
 0x87c   : > { %v2638_v45 = vpop.f32.mrb[42].mxu0 }
 0x87d   : > { %v2649_v46 = vadd.f32 %v3070_v42, %v2641_v43  ;;  %v3659_v47 = vpop.f32.mrb[43].mxu0 }
 0x87f   : > { %v2650_v48 = vmax.f32 %v2649_v46, 0.0 }
 0x881   : > { %v2652_v49 = vsel %vm2651_vm8, %v2650_v48, 0.0 }
 0x882   : > { %v2653_v50 = vrot.slane %v2652_v49, 4 }
 0x884   : > { %v2654_v51 = vadd.f32 %v2653_v50, %v2652_v49 }
 0x886   : > { %v2655_v52 = vrot.slane %v2654_v51, 2 }
 0x888   : > { %v2656_v53 = vadd.f32 %v2655_v52, %v2654_v51 }
 0x88a   : > { %v2657_v54 = vrot.slane %v2656_v53, 1 }
 0x88c   : > { %v2658_v55 = vadd.f32 %v2657_v54, %v2656_v53 }
 0x88e   : > { %3693 = vmatmul.mubr.f32.vlgmr.msra.gmra.mrb[18].mxu1 %v2658_v55 }
 0x961   : > { %v2742_v57 = vpop.f32.mrb[18].mxu1 }
 0x962   : > { %v2743_v58 = vadd.f32 %v2742_v57, %v2675_v56  ;;  %v3694_v59 = vpop.f32.mrb[19].mxu1 }
 0x964   : > { %2747 = vst.msk [vmem:[%s540_s30] sm:$0x1] %vm2746_vm9, %v2743_v58 }
 0x965   : > { %3963 = shalt.err (!%p3960_p3)
}
 0x966   : > { %s3964_s18 = scalar_lea.hbm %s4882_s27, 16  ;;  %s3968_s24 = scalar_lea.hbm %s4963_s17, 32 }
 0x967   : > { %p3965_p4 = scmp.ne.s32.totalorder %s4882_s27, %s3964_s18  ;;  %p3969_p9 = scmp.lt.u32.totalorder %s4882_s27, %s4963_s17 }
 0x968   : > { %p3970_p10 = scmp.lt.u32.totalorder %s3968_s24, %s3964_s18  ;;  %p3972_p12 = scmp.lt.u32.totalorder %s3964_s18, %s4882_s27 }
 0x969   : > { %p3966_p7 = pnand %p3965_p4, %p4146_p5 }
 0x96a   : > { %p3971_p11 = por %p3970_p10, %p3969_p9 }
 0x96b   : > { %p3967_p8 = pneg %p3966_p7 }
 0x96c   : > { %p3973_p13 = por %p3972_p12, %p3971_p11 }
 0x96e   : > { %p3974_p0 = pnand %p3973_p13, %p3967_p8 }
 0x970   : > { %3977 = shalt.err (!%p3974_p0)
}
 0x971   : > { %3822 = dma.vmem_to_hbm [thread:$0]  (%p4146_p5), %s4884_s29, 16, %s4882_s27, %s2749_s0  }
 0x972 PF: > { %s4964_s20 = sld [smem:[#allocation11_spill]]  ;;  %s4965_s21 = sld [smem:[#allocation9_spill]] }
 0x978   : > { %p3828_p1 = scmp.ge.s32.totalorder %s4964_s20, 2  ;;  %s2773_s22 = sand.u32 1, %s4965_s21  }
 0x979   : > { %s2774_s30 = scalar_lea.sflag [#allocation7], %s2773_s22 }
 0x97a   : > { %p3825_p2 = pnand %p3828_p1, %p4150_p6 }
 0x97c   : > { %3995 = dma.done.wait (!%p3825_p2), %s2774_s30, 16  }
 0x97d   : > { %3997 = vsyncadd (!%p3825_p2), %s2774_s30, 4294967280  ;;  %s4967_s27 = sld [smem:[#allocation12_spill]]  ;;  %s4968_s18 = sld [smem:[#allocation10_spill]] }
 0x97e   : > { %s4969_s26 = sld [smem:[#allocation13_spill]]  ;;  %s4970_s24 = smov %s4004_s25 }
 0x983   : > { %p27_p3 = scmp.ge.s32.totalorder %s4967_s27, 4   ;;  %s4971_s25 = smov %s4968_s18 }
 0x985   :  { %29 = sbr.rel (!%p27_p3) target bundleno = 7 (0x7), region = 137 }
 0x98c   :  { %2778 = vsyncpa [#allocation7], 1 }
 0x98d   :  { %2780 = vsyncpa [#allocation7 + $0x1], 1 }

</bundles_post_ra>
